<compile_context>
chip_gen: v6e
topology: v6e:2x2x1
jax: 0.10.0
libtpu: 0.0.40
codegen_flags: <defaults>
</compile_context>

<pallas_src>
import functools

import jax
import jax.numpy as jnp
from jax.experimental import pallas as pl
from jax.experimental.pallas import tpu as pltpu


# ----------------------------------------------------------------------------
# small helpers
# ----------------------------------------------------------------------------
def _rup(x, m):
    return -(-x // m) * m


def _is_pow2(v):
    return v > 0 and (v & (v - 1)) == 0          # fixed precedence (review item)


def _mod(v, m):
    return jnp.bitwise_and(v, m - 1) if _is_pow2(m) else v % m


def _auto_block_batch(n, cap=8):
    """Largest divisor of n that is <= cap while keeping >= 2 grid steps."""
    best = 1
    for d in range(1, min(n, cap) + 1):
        if n % d == 0 and (n // d >= 2 or n == 1):
            best = d
    return best


# ----------------------------------------------------------------------------
# Fused Pallas kernel: 3 x (3x3 "transposed" conv + folded BN + LeakyReLU)
# ----------------------------------------------------------------------------
def _decoder_kernel(x_ref, w1_ref, w2_ref, w3_ref, b1_ref, b2_ref, b3_ref,
                    o_ref, pad_ref, scr_ref, *,
                    NB, C0p, C1p, W2, HW, BASE1, BASE2, SEG):
    """One grid step: NB images through all three conv+BN+LeakyReLU layers."""
    f32 = jnp.float32

    # Column masks (per image, (1, HW)); periodic in W2, so one copy serves all
    # NB lane-stacked images.  Only the W-edge taps need masking -- the H-edge
    # rows are physically zero in the prepared input / padded scratch.
    col = _mod(jax.lax.broadcasted_iota(jnp.int32, (1, HW), 1), W2)
    ok_first = col != 0          # kx == 0 taps read column -1 -> kill at x == 0
    ok_last = col != (W2 - 1)    # kx == 2 taps read column W2 -> kill at x == W2-1

    def lrelu(v):
        return jnp.where(v >= 0.0, v, 0.2 * v)

    # ---- border-only zeroing of the row-padded activation scratch ----------
    # The [BASE2, BASE2+HW) interior is fully overwritten every layer; only the
    # per-image head/tail margins must be zero (1 vreg each).
    zhead = jnp.zeros((C1p, BASE2), f32)
    ztail = jnp.zeros((C1p, SEG - BASE2 - HW), f32)
    for b in range(NB):
        pad_ref[:, b * SEG:b * SEG + BASE2] = zhead
        pad_ref[:, b * SEG + BASE2 + HW:(b + 1) * SEG] = ztail

    # ---- layer 1: stride-2 transposed conv over the pre-dilated flat input --
    # im2col staging: scratch rows [t*C0p, (t+1)*C0p) hold tap t = 3*ky + kx.
    # (kx == 0 needs no mask here: column W2-1 of the dilated buffer is always
    #  zero, and the H margins are zero-padded in the buffer.)
    for b in range(NB):
        for ky in range(3):
            for kx in range(3):
                s = BASE1 + (ky - 1) * W2 + (kx - 1)
                sl = x_ref[b, :, s:s + HW]                        # (C0p, HW)
                if kx == 2:
                    sl = jnp.where(ok_last, sl, 0.0)
                t = 3 * ky + kx
                scr_ref[t * C0p:(t + 1) * C0p, b * HW:(b + 1) * HW] = sl

    acc = jnp.dot(w1_ref[...], scr_ref[0:9 * C0p, :],
                  preferred_element_type=f32)                     # (C1p, NB*HW)
    y = lrelu(acc + b1_ref[...])          # BN scale already folded into w1

    # ---- layers 2 & 3: stride-1 pad-1 conv ----------------------------------
    for w_ref, b_ref in ((w2_ref, b2_ref), (w3_ref, b3_ref)):
        # Park the activation in the row-padded scratch (aligned stores).
        for b in range(NB):
            pad_ref[:, b * SEG + BASE2:b * SEG + BASE2 + HW] = \
                y[:, b * HW:(b + 1) * HW]
        # Stage the 9 taps; the +-1 / +-W2 shifts are folded into these staging
        # reads so the single fat matmul operand load stays 128-lane aligned.
        for b in range(NB):
            for ky in range(3):
                for kx in range(3):
                    s = b * SEG + BASE2 + (ky - 1) * W2 + (kx - 1)
                    sl = pad_ref[:, s:s + HW]                     # (C1p, HW)
                    if kx == 0:
                        sl = jnp.where(ok_first, sl, 0.0)
                    elif kx == 2:
                        sl = jnp.where(ok_last, sl, 0.0)
                    t = 3 * ky + kx
                    scr_ref[t * C1p:(t + 1) * C1p, b * HW:(b + 1) * HW] = sl
        acc = jnp.dot(w_ref[...], scr_ref[0:9 * C1p, :],
                      preferred_element_type=f32)
        y = lrelu(acc + b_ref[...])

    # ---- lane-dense output stores: one (C1p, HW=1024-lane) slab per image ---
    for b in range(NB):
        o_ref[b, :, :] = y[:, b * HW:(b + 1) * HW].astype(o_ref.dtype)


# ----------------------------------------------------------------------------
# Wrapper glue
# ----------------------------------------------------------------------------
def _pack_layer(w_t, gamma, beta, mean, var, cinp, coutp, eps=1e-5):
    """ConvTranspose2d weight (Cin,Cout,3,3) + eval-mode BN params ->
    lane-dense (Coutp, 9*Cinp) matrix with the BN scale folded in (channels
    zero-padded to multiples of 8) and a (Coutp, 1) bias.  Column order is
    (3*ky + kx)*Cinp + cin, matching the kernel's im2col staging."""
    cin, cout = w_t.shape[0], w_t.shape[1]
    scale = gamma / jnp.sqrt(var + eps)
    bias = beta - mean * scale
    # ConvTranspose -> equivalent forward conv: flip the 3x3 taps, swap in/out.
    wc = jnp.transpose(w_t[:, :, ::-1, ::-1], (1, 0, 2, 3))       # (cout,cin,3,3)
    wc = wc * scale[:, None, None, None]                          # fold BN scale
    wc = jnp.pad(wc, ((0, coutp - cout), (0, cinp - cin), (0, 0), (0, 0)))
    wm = jnp.transpose(wc, (0, 2, 3, 1)).reshape(coutp, 9 * cinp)
    bv = jnp.pad(bias, (0, coutp - cout)).reshape(coutp, 1)
    return wm.astype(jnp.float32), bv.astype(jnp.float32)


def decoder_forward(x_nchw, params, *, block_batch=None):
    """params: 3 tuples of raw (w_convT (Cin,Cout,3,3), gamma, beta, mean, var)."""
    N, C0, H, W = x_nchw.shape
    C1 = params[0][0].shape[1]
    H2, W2 = 2 * H, 2 * W
    HW = H2 * W2
    assert HW % 128 == 0, "flattened output spatial dim must be lane aligned"

    C0p, C1p = _rup(C0, 8), _rup(C1, 8)
    BASE1 = _rup(W2 + 1, 128)               # front zero margin, layer-1 input
    LEN1 = _rup(BASE1 + HW + W2 + 1, 128)   # per-image flat layer-1 length
    BASE2 = _rup(W2 + 1, 128)               # front zero margin, act. scratch
    SEG = _rup(BASE2 + HW + W2 + 1, 128)    # per-image scratch segment

    NB = _auto_block_batch(N) if block_batch is None else block_batch
    assert N % NB == 0, "batch must be divisible by the batch block"
    G = N // NB

    # Fold eval-mode BN into lane-dense per-layer weight matrices + biases.
    packed = [_pack_layer(w, g, be, mu, va, C0p if i == 0 else C1p, C1p)
              for i, (w, g, be, mu, va) in enumerate(params)]
    (w1m, b1), (w2m, b2), (w3m, b3) = packed

    # Layer-1 input prep: stride-2 zero dilation (interior padding), keep row
    # width == W2 (the extra right column stays zero), flatten, add margins.
    xd = jax.lax.pad(x_nchw.astype(jnp.float32), jnp.float32(0.0),
                     ((0, 0, 0), (0, C0p - C0, 0), (0, 0, 1), (0, 1, 1)))
    flat = xd.reshape(N, C0p, (H2 - 1) * W2)
    x_prep = jax.lax.pad(flat, jnp.float32(0.0),
                         ((0, 0, 0), (0, 0, 0),
                          (BASE1, LEN1 - BASE1 - (H2 - 1) * W2, 0)))

    kernel = functools.partial(
        _decoder_kernel, NB=NB, C0p=C0p, C1p=C1p, W2=W2, HW=HW,
        BASE1=BASE1, BASE2=BASE2, SEG=SEG)

    out = pl.pallas_call(
        kernel,
        out_shape=jax.ShapeDtypeStruct((N, C1p, HW), jnp.float32),
        grid=(G,),
        in_specs=[
            pl.BlockSpec((NB, C0p, LEN1), lambda g: (g, 0, 0)),
            pl.BlockSpec((C1p, 9 * C0p), lambda g: (0, 0)),
            pl.BlockSpec((C1p, 9 * C1p), lambda g: (0, 0)),
            pl.BlockSpec((C1p, 9 * C1p), lambda g: (0, 0)),
            pl.BlockSpec((C1p, 1), lambda g: (0, 0)),
            pl.BlockSpec((C1p, 1), lambda g: (0, 0)),
            pl.BlockSpec((C1p, 1), lambda g: (0, 0)),
        ],
        out_specs=pl.BlockSpec((NB, C1p, HW), lambda g: (g, 0, 0)),
        scratch_shapes=[
            pltpu.VMEM((C1p, NB * SEG), jnp.float32),               # padded act.
            pltpu.VMEM((9 * max(C0p, C1p), NB * HW), jnp.float32),  # im2col tile
        ],
        compiler_params=pltpu.CompilerParams(
            dimension_semantics=("parallel",)),
    )(x_prep, w1m, w2m, w3m, b1, b2, b3)

    # (N, C1p, HW) -> NCHW; drop the channel padding.  No transposes needed.
    return out[:, :C1, :].reshape(N, C1, H2, W2)


# ----------------------------------------------------------------------------
# Pure-JAX (XLA conv) reference for the correctness check
# ----------------------------------------------------------------------------
def decoder_forward_ref(x_nchw, params, eps=1e-5):
    x = jnp.transpose(x_nchw, (0, 2, 3, 1)).astype(jnp.float32)       # NHWC
    for i, (w_t, gamma, beta, mean, var) in enumerate(params):
        w_hwio = jnp.transpose(w_t[:, :, ::-1, ::-1], (2, 3, 0, 1))   # (3,3,Ci,Co)
        if i == 0:   # ConvT s=2,p=1,out_pad=1 -> dilate 2, pad lo=1 hi=2
            xp = jax.lax.pad(x, jnp.float32(0.0),
                             ((0, 0, 0), (1, 2, 1), (1, 2, 1), (0, 0, 0)))
        else:        # ConvT s=1,p=1 -> pad 1
            xp = jax.lax.pad(x, jnp.float32(0.0),
                             ((0, 0, 0), (1, 1, 0), (1, 1, 0), (0, 0, 0)))
        y = jax.lax.conv_general_dilated(
            xp, w_hwio, window_strides=(1, 1), padding="VALID",
            dimension_numbers=("NHWC", "HWIO", "NHWC"))
        scale = gamma / jnp.sqrt(var + eps)
        bias = beta - mean * scale
        y = y * scale.reshape(1, 1, 1, -1) + bias.reshape(1, 1, 1, -1)
        x = jnp.where(y >= 0.0, y, 0.2 * y)
    return jnp.transpose(x, (0, 3, 1, 2))


# ----------------------------------------------------------------------------
# Deterministic parameter init (shapes from Decoder.__init__)
# ----------------------------------------------------------------------------
def init_params(key, ch_list):
    c0, c1 = ch_list
    layer_io = [(c0, c1), (c1, c1), (c1, c1)]
    params = []
    for (cin, cout), k in zip(layer_io, jax.random.split(key, len(layer_io))):
        kw, kg, kb, km, kv = jax.random.split(k, 5)
        w_t = 0.1 * jax.random.normal(kw, (cin, cout, 3, 3), jnp.float32)
        gamma = 1.0 + 0.1 * jax.random.normal(kg, (cout,), jnp.float32)
        beta = 0.1 * jax.random.normal(kb, (cout,), jnp.float32)
        mean = 0.1 * jax.random.normal(km, (cout,), jnp.float32)
        var = 1.0 + 0.1 * jax.random.uniform(kv, (cout,), jnp.float32)
        params.append((w_t, gamma, beta, mean, var))
    return params


if __name__ == "__main__":
    key = jax.random.PRNGKey(0)
    k_x, k_p = jax.random.split(key)

    ch_list = [4, 8]                       # Decoder(ch_list=[4, 8])
    N, H, W = 2, 16, 16
    x = jax.random.normal(k_x, (N, ch_list[0], H, W), jnp.float32)   # NCHW
    params = init_params(k_p, ch_list)

    ref = jax.block_until_ready(decoder_forward_ref(x, params))

    # Auto batch block (NB=1 here): keeps >=2 grid steps so the "parallel"
    # grid axis can shard across the two TensorCores of a v7x chip.
    fwd = jax.jit(decoder_forward)
    out = jax.block_until_ready(fwd(x, params))
    assert out.shape == (N, ch_list[1], 2 * H, 2 * W), out.shape
    err = float(jnp.max(jnp.abs(out - ref)))
    assert jnp.allclose(out, ref, rtol=1e-4, atol=1e-4), err

    # Batch-blocked path: both images lane-stacked into one grid step (the
    # configuration to prefer on single-TensorCore v5e/v6e or for larger N).
    fwd_blk = jax.jit(functools.partial(decoder_forward, block_batch=2))
    out_blk = jax.block_until_ready(fwd_blk(x, params))
    err_blk = float(jnp.max(jnp.abs(out_blk - ref)))
    assert jnp.allclose(out_blk, ref, rtol=1e-4, atol=1e-4), err_blk

    print("KERNEL_OK")
</pallas_src>

<mosaic_0001>
module attributes {stable_mosaic.version = 11 : i64} {
  func.func @_decoder_kernel(%arg0: i32, %arg1: memref<1x8x1280xf32, #tpu.memory_space<vmem>>, %arg2: memref<8x72xf32, #tpu.memory_space<vmem>>, %arg3: memref<8x72xf32, #tpu.memory_space<vmem>>, %arg4: memref<8x72xf32, #tpu.memory_space<vmem>>, %arg5: memref<8x1xf32, #tpu.memory_space<vmem>>, %arg6: memref<8x1xf32, #tpu.memory_space<vmem>>, %arg7: memref<8x1xf32, #tpu.memory_space<vmem>>, %arg8: memref<1x8x1024xf32, #tpu.memory_space<vmem>>, %arg9: memref<8x1280xf32, #tpu.memory_space<vmem>>, %arg10: memref<72x1024xf32, #tpu.memory_space<vmem>>) attributes {dimension_semantics = [#tpu.dimension_semantics<parallel>], iteration_bounds = array<i64: 2>, scalar_prefetch = 0 : i64, scratch_operands = 2 : i64, tpu.core_type = #tpu.core_type<tc>, window_params = [{transform_indices = @transform_0, window_bounds = array<i64: 1, 8, 1280>}, {pipeline_mode = #tpu.pipeline_mode<synchronous>, transform_indices = @transform_1, window_bounds = array<i64: 8, 72>}, {pipeline_mode = #tpu.pipeline_mode<synchronous>, transform_indices = @transform_2, window_bounds = array<i64: 8, 72>}, {pipeline_mode = #tpu.pipeline_mode<synchronous>, transform_indices = @transform_3, window_bounds = array<i64: 8, 72>}, {pipeline_mode = #tpu.pipeline_mode<synchronous>, transform_indices = @transform_4, window_bounds = array<i64: 8, 1>}, {pipeline_mode = #tpu.pipeline_mode<synchronous>, transform_indices = @transform_5, window_bounds = array<i64: 8, 1>}, {pipeline_mode = #tpu.pipeline_mode<synchronous>, transform_indices = @transform_6, window_bounds = array<i64: 8, 1>}, {transform_indices = @transform_7, window_bounds = array<i64: 1, 8, 1024>}]} {
    %0 = tpu.iota {dimensions = array<i32: 1>} : vector<1x1024xi32>
    %c31_i32 = arith.constant 31 : i32
    %1 = vector.broadcast %c31_i32 : i32 to vector<1x1024xi32>
    %2 = arith.andi %0, %1 : vector<1x1024xi32>
    %c0_i32 = arith.constant 0 : i32
    %3 = vector.broadcast %c0_i32 : i32 to vector<1x1024xi32>
    %4 = arith.cmpi ne, %2, %3 : vector<1x1024xi32>
    %c31_i32_0 = arith.constant 31 : i32
    %5 = vector.broadcast %c31_i32_0 : i32 to vector<1x1024xi32>
    %6 = arith.cmpi ne, %2, %5 : vector<1x1024xi32>
    %cst = arith.constant 0.000000e+00 : f32
    %7 = vector.broadcast %cst : f32 to vector<8x128xf32>
    %cst_1 = arith.constant 0.000000e+00 : f32
    %8 = vector.broadcast %cst_1 : f32 to vector<8x128xf32>
    %c0 = arith.constant 0 : index
    %c0_2 = arith.constant 0 : index
    %9 = vector.load %arg9[%c0, %c0_2] : memref<8x1280xf32, #tpu.memory_space<vmem>>, vector<8x128xf32>
    tpu.vector_store %arg9[%c0, %c0_2], %7 {strides = array<i32>} : memref<8x1280xf32, #tpu.memory_space<vmem>>, vector<8x128xf32>,
    %c0_3 = arith.constant 0 : index
    %c1152 = arith.constant 1152 : index
    %10 = vector.load %arg9[%c0_3, %c1152] : memref<8x1280xf32, #tpu.memory_space<vmem>>, vector<8x128xf32>
    tpu.vector_store %arg9[%c0_3, %c1152], %8 {strides = array<i32>} : memref<8x1280xf32, #tpu.memory_space<vmem>>, vector<8x128xf32>,
    %c0_4 = arith.constant 0 : index
    %c0_5 = arith.constant 0 : index
    %c95 = arith.constant 95 : index
    %11 = vector.load %arg1[%c0_4, %c0_5, %c95] : memref<1x8x1280xf32, #tpu.memory_space<vmem>>, vector<1x8x1024xf32>
    %12 = vector.shape_cast %11 : vector<1x8x1024xf32> to vector<8x1024xf32>
    %c0_6 = arith.constant 0 : index
    %c0_7 = arith.constant 0 : index
    %13 = vector.load %arg10[%c0_6, %c0_7] : memref<72x1024xf32, #tpu.memory_space<vmem>>, vector<8x1024xf32>
    tpu.vector_store %arg10[%c0_6, %c0_7], %12 {strides = array<i32>} : memref<72x1024xf32, #tpu.memory_space<vmem>>, vector<8x1024xf32>,
    %c0_8 = arith.constant 0 : index
    %c0_9 = arith.constant 0 : index
    %c96 = arith.constant 96 : index
    %14 = vector.load %arg1[%c0_8, %c0_9, %c96] : memref<1x8x1280xf32, #tpu.memory_space<vmem>>, vector<1x8x1024xf32>
    %15 = vector.shape_cast %14 : vector<1x8x1024xf32> to vector<8x1024xf32>
    %c8 = arith.constant 8 : index
    %c0_10 = arith.constant 0 : index
    %16 = vector.load %arg10[%c8, %c0_10] : memref<72x1024xf32, #tpu.memory_space<vmem>>, vector<8x1024xf32>
    tpu.vector_store %arg10[%c8, %c0_10], %15 {strides = array<i32>} : memref<72x1024xf32, #tpu.memory_space<vmem>>, vector<8x1024xf32>,
    %c0_11 = arith.constant 0 : index
    %c0_12 = arith.constant 0 : index
    %c97 = arith.constant 97 : index
    %17 = vector.load %arg1[%c0_11, %c0_12, %c97] : memref<1x8x1280xf32, #tpu.memory_space<vmem>>, vector<1x8x1024xf32>
    %18 = vector.shape_cast %17 : vector<1x8x1024xf32> to vector<8x1024xf32>
    %cst_13 = arith.constant 0.000000e+00 : f32
    %19 = vector.shape_cast %6 : vector<1x1024xi1> to vector<1x1024xi1>
    %20 = vector.broadcast %19 : vector<1x1024xi1> to vector<8x1024xi1>
    %21 = vector.broadcast %cst_13 : f32 to vector<8x1024xf32>
    %22 = arith.select %20, %18, %21 : vector<8x1024xi1>, vector<8x1024xf32>
    %c16 = arith.constant 16 : index
    %c0_14 = arith.constant 0 : index
    %23 = vector.load %arg10[%c16, %c0_14] : memref<72x1024xf32, #tpu.memory_space<vmem>>, vector<8x1024xf32>
    tpu.vector_store %arg10[%c16, %c0_14], %22 {strides = array<i32>} : memref<72x1024xf32, #tpu.memory_space<vmem>>, vector<8x1024xf32>,
    %c0_15 = arith.constant 0 : index
    %c0_16 = arith.constant 0 : index
    %c127 = arith.constant 127 : index
    %24 = vector.load %arg1[%c0_15, %c0_16, %c127] : memref<1x8x1280xf32, #tpu.memory_space<vmem>>, vector<1x8x1024xf32>
    %25 = vector.shape_cast %24 : vector<1x8x1024xf32> to vector<8x1024xf32>
    %c24 = arith.constant 24 : index
    %c0_17 = arith.constant 0 : index
    %26 = vector.load %arg10[%c24, %c0_17] : memref<72x1024xf32, #tpu.memory_space<vmem>>, vector<8x1024xf32>
    tpu.vector_store %arg10[%c24, %c0_17], %25 {strides = array<i32>} : memref<72x1024xf32, #tpu.memory_space<vmem>>, vector<8x1024xf32>,
    %c0_18 = arith.constant 0 : index
    %c0_19 = arith.constant 0 : index
    %c128 = arith.constant 128 : index
    %27 = vector.load %arg1[%c0_18, %c0_19, %c128] : memref<1x8x1280xf32, #tpu.memory_space<vmem>>, vector<1x8x1024xf32>
    %28 = vector.shape_cast %27 : vector<1x8x1024xf32> to vector<8x1024xf32>
    %c32 = arith.constant 32 : index
    %c0_20 = arith.constant 0 : index
    %29 = vector.load %arg10[%c32, %c0_20] : memref<72x1024xf32, #tpu.memory_space<vmem>>, vector<8x1024xf32>
    tpu.vector_store %arg10[%c32, %c0_20], %28 {strides = array<i32>} : memref<72x1024xf32, #tpu.memory_space<vmem>>, vector<8x1024xf32>,
    %c0_21 = arith.constant 0 : index
    %c0_22 = arith.constant 0 : index
    %c129 = arith.constant 129 : index
    %30 = vector.load %arg1[%c0_21, %c0_22, %c129] : memref<1x8x1280xf32, #tpu.memory_space<vmem>>, vector<1x8x1024xf32>
    %31 = vector.shape_cast %30 : vector<1x8x1024xf32> to vector<8x1024xf32>
    %cst_23 = arith.constant 0.000000e+00 : f32
    %32 = vector.shape_cast %6 : vector<1x1024xi1> to vector<1x1024xi1>
    %33 = vector.broadcast %32 : vector<1x1024xi1> to vector<8x1024xi1>
    %34 = vector.broadcast %cst_23 : f32 to vector<8x1024xf32>
    %35 = arith.select %33, %31, %34 : vector<8x1024xi1>, vector<8x1024xf32>
    %c40 = arith.constant 40 : index
    %c0_24 = arith.constant 0 : index
    %36 = vector.load %arg10[%c40, %c0_24] : memref<72x1024xf32, #tpu.memory_space<vmem>>, vector<8x1024xf32>
    tpu.vector_store %arg10[%c40, %c0_24], %35 {strides = array<i32>} : memref<72x1024xf32, #tpu.memory_space<vmem>>, vector<8x1024xf32>,
    %c0_25 = arith.constant 0 : index
    %c0_26 = arith.constant 0 : index
    %c159 = arith.constant 159 : index
    %37 = vector.load %arg1[%c0_25, %c0_26, %c159] : memref<1x8x1280xf32, #tpu.memory_space<vmem>>, vector<1x8x1024xf32>
    %38 = vector.shape_cast %37 : vector<1x8x1024xf32> to vector<8x1024xf32>
    %c48 = arith.constant 48 : index
    %c0_27 = arith.constant 0 : index
    %39 = vector.load %arg10[%c48, %c0_27] : memref<72x1024xf32, #tpu.memory_space<vmem>>, vector<8x1024xf32>
    tpu.vector_store %arg10[%c48, %c0_27], %38 {strides = array<i32>} : memref<72x1024xf32, #tpu.memory_space<vmem>>, vector<8x1024xf32>,
    %c0_28 = arith.constant 0 : index
    %c0_29 = arith.constant 0 : index
    %c160 = arith.constant 160 : index
    %40 = vector.load %arg1[%c0_28, %c0_29, %c160] : memref<1x8x1280xf32, #tpu.memory_space<vmem>>, vector<1x8x1024xf32>
    %41 = vector.shape_cast %40 : vector<1x8x1024xf32> to vector<8x1024xf32>
    %c56 = arith.constant 56 : index
    %c0_30 = arith.constant 0 : index
    %42 = vector.load %arg10[%c56, %c0_30] : memref<72x1024xf32, #tpu.memory_space<vmem>>, vector<8x1024xf32>
    tpu.vector_store %arg10[%c56, %c0_30], %41 {strides = array<i32>} : memref<72x1024xf32, #tpu.memory_space<vmem>>, vector<8x1024xf32>,
    %c0_31 = arith.constant 0 : index
    %c0_32 = arith.constant 0 : index
    %c161 = arith.constant 161 : index
    %43 = vector.load %arg1[%c0_31, %c0_32, %c161] : memref<1x8x1280xf32, #tpu.memory_space<vmem>>, vector<1x8x1024xf32>
    %44 = vector.shape_cast %43 : vector<1x8x1024xf32> to vector<8x1024xf32>
    %cst_33 = arith.constant 0.000000e+00 : f32
    %45 = vector.shape_cast %6 : vector<1x1024xi1> to vector<1x1024xi1>
    %46 = vector.broadcast %45 : vector<1x1024xi1> to vector<8x1024xi1>
    %47 = vector.broadcast %cst_33 : f32 to vector<8x1024xf32>
    %48 = arith.select %46, %44, %47 : vector<8x1024xi1>, vector<8x1024xf32>
    %c64 = arith.constant 64 : index
    %c0_34 = arith.constant 0 : index
    %49 = vector.load %arg10[%c64, %c0_34] : memref<72x1024xf32, #tpu.memory_space<vmem>>, vector<8x1024xf32>
    tpu.vector_store %arg10[%c64, %c0_34], %48 {strides = array<i32>} : memref<72x1024xf32, #tpu.memory_space<vmem>>, vector<8x1024xf32>,
    %c0_35 = arith.constant 0 : index
    %c0_36 = arith.constant 0 : index
    %50 = vector.load %arg2[%c0_35, %c0_36] : memref<8x72xf32, #tpu.memory_space<vmem>>, vector<8x72xf32>
    %c0_37 = arith.constant 0 : index
    %c0_38 = arith.constant 0 : index
    %51 = vector.load %arg10[%c0_37, %c0_38] : memref<72x1024xf32, #tpu.memory_space<vmem>>, vector<72x1024xf32>
    %cst_39 = arith.constant dense<0.000000e+00> : vector<8x1024xf32>
    %52 = tpu.matmul %50, %51, %cst_39 {dimension_numbers = #tpu.dot_dimension_numbers<[1], [0], [0], [1], [0, 0, 1, 1], [], []>} : vector<8x72xf32>, vector<72x1024xf32>, vector<8x1024xf32> -> vector<8x1024xf32>
    %c0_40 = arith.constant 0 : index
    %c0_41 = arith.constant 0 : index
    %53 = vector.load %arg5[%c0_40, %c0_41] : memref<8x1xf32, #tpu.memory_space<vmem>>, vector<8x1xf32>
    %54 = vector.broadcast %53 : vector<8x1xf32> to vector<8x1024xf32>
    %55 = arith.addf %52, %54 : vector<8x1024xf32>
    %cst_42 = arith.constant 0.000000e+00 : f32
    %56 = vector.broadcast %cst_42 : f32 to vector<8x1024xf32>
    %57 = arith.cmpf oge, %55, %56 : vector<8x1024xf32>
    %cst_43 = arith.constant 2.000000e-01 : f32
    %58 = vector.broadcast %cst_43 : f32 to vector<8x1024xf32>
    %59 = arith.mulf %58, %55 : vector<8x1024xf32>
    %60 = arith.select %57, %55, %59 : vector<8x1024xi1>, vector<8x1024xf32>
    %c0_44 = arith.constant 0 : index
    %c128_45 = arith.constant 128 : index
    %61 = vector.load %arg9[%c0_44, %c128_45] : memref<8x1280xf32, #tpu.memory_space<vmem>>, vector<8x1024xf32>
    tpu.vector_store %arg9[%c0_44, %c128_45], %60 {strides = array<i32>} : memref<8x1280xf32, #tpu.memory_space<vmem>>, vector<8x1024xf32>,
    %c0_46 = arith.constant 0 : index
    %c95_47 = arith.constant 95 : index
    %62 = vector.load %arg9[%c0_46, %c95_47] : memref<8x1280xf32, #tpu.memory_space<vmem>>, vector<8x1024xf32>
    %cst_48 = arith.constant 0.000000e+00 : f32
    %63 = vector.shape_cast %4 : vector<1x1024xi1> to vector<1x1024xi1>
    %64 = vector.broadcast %63 : vector<1x1024xi1> to vector<8x1024xi1>
    %65 = vector.broadcast %cst_48 : f32 to vector<8x1024xf32>
    %66 = arith.select %64, %62, %65 : vector<8x1024xi1>, vector<8x1024xf32>
    %c0_49 = arith.constant 0 : index
    %c0_50 = arith.constant 0 : index
    %67 = vector.load %arg10[%c0_49, %c0_50] : memref<72x1024xf32, #tpu.memory_space<vmem>>, vector<8x1024xf32>
    tpu.vector_store %arg10[%c0_49, %c0_50], %66 {strides = array<i32>} : memref<72x1024xf32, #tpu.memory_space<vmem>>, vector<8x1024xf32>,
    %c0_51 = arith.constant 0 : index
    %c96_52 = arith.constant 96 : index
    %68 = vector.load %arg9[%c0_51, %c96_52] : memref<8x1280xf32, #tpu.memory_space<vmem>>, vector<8x1024xf32>
    %c8_53 = arith.constant 8 : index
    %c0_54 = arith.constant 0 : index
    %69 = vector.load %arg10[%c8_53, %c0_54] : memref<72x1024xf32, #tpu.memory_space<vmem>>, vector<8x1024xf32>
    tpu.vector_store %arg10[%c8_53, %c0_54], %68 {strides = array<i32>} : memref<72x1024xf32, #tpu.memory_space<vmem>>, vector<8x1024xf32>,
    %c0_55 = arith.constant 0 : index
    %c97_56 = arith.constant 97 : index
    %70 = vector.load %arg9[%c0_55, %c97_56] : memref<8x1280xf32, #tpu.memory_space<vmem>>, vector<8x1024xf32>
    %cst_57 = arith.constant 0.000000e+00 : f32
    %71 = vector.shape_cast %6 : vector<1x1024xi1> to vector<1x1024xi1>
    %72 = vector.broadcast %71 : vector<1x1024xi1> to vector<8x1024xi1>
    %73 = vector.broadcast %cst_57 : f32 to vector<8x1024xf32>
    %74 = arith.select %72, %70, %73 : vector<8x1024xi1>, vector<8x1024xf32>
    %c16_58 = arith.constant 16 : index
    %c0_59 = arith.constant 0 : index
    %75 = vector.load %arg10[%c16_58, %c0_59] : memref<72x1024xf32, #tpu.memory_space<vmem>>, vector<8x1024xf32>
    tpu.vector_store %arg10[%c16_58, %c0_59], %74 {strides = array<i32>} : memref<72x1024xf32, #tpu.memory_space<vmem>>, vector<8x1024xf32>,
    %c0_60 = arith.constant 0 : index
    %c127_61 = arith.constant 127 : index
    %76 = vector.load %arg9[%c0_60, %c127_61] : memref<8x1280xf32, #tpu.memory_space<vmem>>, vector<8x1024xf32>
    %cst_62 = arith.constant 0.000000e+00 : f32
    %77 = vector.shape_cast %4 : vector<1x1024xi1> to vector<1x1024xi1>
    %78 = vector.broadcast %77 : vector<1x1024xi1> to vector<8x1024xi1>
    %79 = vector.broadcast %cst_62 : f32 to vector<8x1024xf32>
    %80 = arith.select %78, %76, %79 : vector<8x1024xi1>, vector<8x1024xf32>
    %c24_63 = arith.constant 24 : index
    %c0_64 = arith.constant 0 : index
    %81 = vector.load %arg10[%c24_63, %c0_64] : memref<72x1024xf32, #tpu.memory_space<vmem>>, vector<8x1024xf32>
    tpu.vector_store %arg10[%c24_63, %c0_64], %80 {strides = array<i32>} : memref<72x1024xf32, #tpu.memory_space<vmem>>, vector<8x1024xf32>,
    %c0_65 = arith.constant 0 : index
    %c128_66 = arith.constant 128 : index
    %82 = vector.load %arg9[%c0_65, %c128_66] : memref<8x1280xf32, #tpu.memory_space<vmem>>, vector<8x1024xf32>
    %c32_67 = arith.constant 32 : index
    %c0_68 = arith.constant 0 : index
    %83 = vector.load %arg10[%c32_67, %c0_68] : memref<72x1024xf32, #tpu.memory_space<vmem>>, vector<8x1024xf32>
    tpu.vector_store %arg10[%c32_67, %c0_68], %82 {strides = array<i32>} : memref<72x1024xf32, #tpu.memory_space<vmem>>, vector<8x1024xf32>,
    %c0_69 = arith.constant 0 : index
    %c129_70 = arith.constant 129 : index
    %84 = vector.load %arg9[%c0_69, %c129_70] : memref<8x1280xf32, #tpu.memory_space<vmem>>, vector<8x1024xf32>
    %cst_71 = arith.constant 0.000000e+00 : f32
    %85 = vector.shape_cast %6 : vector<1x1024xi1> to vector<1x1024xi1>
    %86 = vector.broadcast %85 : vector<1x1024xi1> to vector<8x1024xi1>
    %87 = vector.broadcast %cst_71 : f32 to vector<8x1024xf32>
    %88 = arith.select %86, %84, %87 : vector<8x1024xi1>, vector<8x1024xf32>
    %c40_72 = arith.constant 40 : index
    %c0_73 = arith.constant 0 : index
    %89 = vector.load %arg10[%c40_72, %c0_73] : memref<72x1024xf32, #tpu.memory_space<vmem>>, vector<8x1024xf32>
    tpu.vector_store %arg10[%c40_72, %c0_73], %88 {strides = array<i32>} : memref<72x1024xf32, #tpu.memory_space<vmem>>, vector<8x1024xf32>,
    %c0_74 = arith.constant 0 : index
    %c159_75 = arith.constant 159 : index
    %90 = vector.load %arg9[%c0_74, %c159_75] : memref<8x1280xf32, #tpu.memory_space<vmem>>, vector<8x1024xf32>
    %cst_76 = arith.constant 0.000000e+00 : f32
    %91 = vector.shape_cast %4 : vector<1x1024xi1> to vector<1x1024xi1>
    %92 = vector.broadcast %91 : vector<1x1024xi1> to vector<8x1024xi1>
    %93 = vector.broadcast %cst_76 : f32 to vector<8x1024xf32>
    %94 = arith.select %92, %90, %93 : vector<8x1024xi1>, vector<8x1024xf32>
    %c48_77 = arith.constant 48 : index
    %c0_78 = arith.constant 0 : index
    %95 = vector.load %arg10[%c48_77, %c0_78] : memref<72x1024xf32, #tpu.memory_space<vmem>>, vector<8x1024xf32>
    tpu.vector_store %arg10[%c48_77, %c0_78], %94 {strides = array<i32>} : memref<72x1024xf32, #tpu.memory_space<vmem>>, vector<8x1024xf32>,
    %c0_79 = arith.constant 0 : index
    %c160_80 = arith.constant 160 : index
    %96 = vector.load %arg9[%c0_79, %c160_80] : memref<8x1280xf32, #tpu.memory_space<vmem>>, vector<8x1024xf32>
    %c56_81 = arith.constant 56 : index
    %c0_82 = arith.constant 0 : index
    %97 = vector.load %arg10[%c56_81, %c0_82] : memref<72x1024xf32, #tpu.memory_space<vmem>>, vector<8x1024xf32>
    tpu.vector_store %arg10[%c56_81, %c0_82], %96 {strides = array<i32>} : memref<72x1024xf32, #tpu.memory_space<vmem>>, vector<8x1024xf32>,
    %c0_83 = arith.constant 0 : index
    %c161_84 = arith.constant 161 : index
    %98 = vector.load %arg9[%c0_83, %c161_84] : memref<8x1280xf32, #tpu.memory_space<vmem>>, vector<8x1024xf32>
    %cst_85 = arith.constant 0.000000e+00 : f32
    %99 = vector.shape_cast %6 : vector<1x1024xi1> to vector<1x1024xi1>
    %100 = vector.broadcast %99 : vector<1x1024xi1> to vector<8x1024xi1>
    %101 = vector.broadcast %cst_85 : f32 to vector<8x1024xf32>
    %102 = arith.select %100, %98, %101 : vector<8x1024xi1>, vector<8x1024xf32>
    %c64_86 = arith.constant 64 : index
    %c0_87 = arith.constant 0 : index
    %103 = vector.load %arg10[%c64_86, %c0_87] : memref<72x1024xf32, #tpu.memory_space<vmem>>, vector<8x1024xf32>
    tpu.vector_store %arg10[%c64_86, %c0_87], %102 {strides = array<i32>} : memref<72x1024xf32, #tpu.memory_space<vmem>>, vector<8x1024xf32>,
    %c0_88 = arith.constant 0 : index
    %c0_89 = arith.constant 0 : index
    %104 = vector.load %arg3[%c0_88, %c0_89] : memref<8x72xf32, #tpu.memory_space<vmem>>, vector<8x72xf32>
    %c0_90 = arith.constant 0 : index
    %c0_91 = arith.constant 0 : index
    %105 = vector.load %arg10[%c0_90, %c0_91] : memref<72x1024xf32, #tpu.memory_space<vmem>>, vector<72x1024xf32>
    %cst_92 = arith.constant dense<0.000000e+00> : vector<8x1024xf32>
    %106 = tpu.matmul %104, %105, %cst_92 {dimension_numbers = #tpu.dot_dimension_numbers<[1], [0], [0], [1], [0, 0, 1, 1], [], []>} : vector<8x72xf32>, vector<72x1024xf32>, vector<8x1024xf32> -> vector<8x1024xf32>
    %c0_93 = arith.constant 0 : index
    %c0_94 = arith.constant 0 : index
    %107 = vector.load %arg6[%c0_93, %c0_94] : memref<8x1xf32, #tpu.memory_space<vmem>>, vector<8x1xf32>
    %108 = vector.broadcast %107 : vector<8x1xf32> to vector<8x1024xf32>
    %109 = arith.addf %106, %108 : vector<8x1024xf32>
    %cst_95 = arith.constant 0.000000e+00 : f32
    %110 = vector.broadcast %cst_95 : f32 to vector<8x1024xf32>
    %111 = arith.cmpf oge, %109, %110 : vector<8x1024xf32>
    %cst_96 = arith.constant 2.000000e-01 : f32
    %112 = vector.broadcast %cst_96 : f32 to vector<8x1024xf32>
    %113 = arith.mulf %112, %109 : vector<8x1024xf32>
    %114 = arith.select %111, %109, %113 : vector<8x1024xi1>, vector<8x1024xf32>
    %c0_97 = arith.constant 0 : index
    %c128_98 = arith.constant 128 : index
    %115 = vector.load %arg9[%c0_97, %c128_98] : memref<8x1280xf32, #tpu.memory_space<vmem>>, vector<8x1024xf32>
    tpu.vector_store %arg9[%c0_97, %c128_98], %114 {strides = array<i32>} : memref<8x1280xf32, #tpu.memory_space<vmem>>, vector<8x1024xf32>,
    %c0_99 = arith.constant 0 : index
    %c95_100 = arith.constant 95 : index
    %116 = vector.load %arg9[%c0_99, %c95_100] : memref<8x1280xf32, #tpu.memory_space<vmem>>, vector<8x1024xf32>
    %cst_101 = arith.constant 0.000000e+00 : f32
    %117 = vector.shape_cast %4 : vector<1x1024xi1> to vector<1x1024xi1>
    %118 = vector.broadcast %117 : vector<1x1024xi1> to vector<8x1024xi1>
    %119 = vector.broadcast %cst_101 : f32 to vector<8x1024xf32>
    %120 = arith.select %118, %116, %119 : vector<8x1024xi1>, vector<8x1024xf32>
    %c0_102 = arith.constant 0 : index
    %c0_103 = arith.constant 0 : index
    %121 = vector.load %arg10[%c0_102, %c0_103] : memref<72x1024xf32, #tpu.memory_space<vmem>>, vector<8x1024xf32>
    tpu.vector_store %arg10[%c0_102, %c0_103], %120 {strides = array<i32>} : memref<72x1024xf32, #tpu.memory_space<vmem>>, vector<8x1024xf32>,
    %c0_104 = arith.constant 0 : index
    %c96_105 = arith.constant 96 : index
    %122 = vector.load %arg9[%c0_104, %c96_105] : memref<8x1280xf32, #tpu.memory_space<vmem>>, vector<8x1024xf32>
    %c8_106 = arith.constant 8 : index
    %c0_107 = arith.constant 0 : index
    %123 = vector.load %arg10[%c8_106, %c0_107] : memref<72x1024xf32, #tpu.memory_space<vmem>>, vector<8x1024xf32>
    tpu.vector_store %arg10[%c8_106, %c0_107], %122 {strides = array<i32>} : memref<72x1024xf32, #tpu.memory_space<vmem>>, vector<8x1024xf32>,
    %c0_108 = arith.constant 0 : index
    %c97_109 = arith.constant 97 : index
    %124 = vector.load %arg9[%c0_108, %c97_109] : memref<8x1280xf32, #tpu.memory_space<vmem>>, vector<8x1024xf32>
    %cst_110 = arith.constant 0.000000e+00 : f32
    %125 = vector.shape_cast %6 : vector<1x1024xi1> to vector<1x1024xi1>
    %126 = vector.broadcast %125 : vector<1x1024xi1> to vector<8x1024xi1>
    %127 = vector.broadcast %cst_110 : f32 to vector<8x1024xf32>
    %128 = arith.select %126, %124, %127 : vector<8x1024xi1>, vector<8x1024xf32>
    %c16_111 = arith.constant 16 : index
    %c0_112 = arith.constant 0 : index
    %129 = vector.load %arg10[%c16_111, %c0_112] : memref<72x1024xf32, #tpu.memory_space<vmem>>, vector<8x1024xf32>
    tpu.vector_store %arg10[%c16_111, %c0_112], %128 {strides = array<i32>} : memref<72x1024xf32, #tpu.memory_space<vmem>>, vector<8x1024xf32>,
    %c0_113 = arith.constant 0 : index
    %c127_114 = arith.constant 127 : index
    %130 = vector.load %arg9[%c0_113, %c127_114] : memref<8x1280xf32, #tpu.memory_space<vmem>>, vector<8x1024xf32>
    %cst_115 = arith.constant 0.000000e+00 : f32
    %131 = vector.shape_cast %4 : vector<1x1024xi1> to vector<1x1024xi1>
    %132 = vector.broadcast %131 : vector<1x1024xi1> to vector<8x1024xi1>
    %133 = vector.broadcast %cst_115 : f32 to vector<8x1024xf32>
    %134 = arith.select %132, %130, %133 : vector<8x1024xi1>, vector<8x1024xf32>
    %c24_116 = arith.constant 24 : index
    %c0_117 = arith.constant 0 : index
    %135 = vector.load %arg10[%c24_116, %c0_117] : memref<72x1024xf32, #tpu.memory_space<vmem>>, vector<8x1024xf32>
    tpu.vector_store %arg10[%c24_116, %c0_117], %134 {strides = array<i32>} : memref<72x1024xf32, #tpu.memory_space<vmem>>, vector<8x1024xf32>,
    %c0_118 = arith.constant 0 : index
    %c128_119 = arith.constant 128 : index
    %136 = vector.load %arg9[%c0_118, %c128_119] : memref<8x1280xf32, #tpu.memory_space<vmem>>, vector<8x1024xf32>
    %c32_120 = arith.constant 32 : index
    %c0_121 = arith.constant 0 : index
    %137 = vector.load %arg10[%c32_120, %c0_121] : memref<72x1024xf32, #tpu.memory_space<vmem>>, vector<8x1024xf32>
    tpu.vector_store %arg10[%c32_120, %c0_121], %136 {strides = array<i32>} : memref<72x1024xf32, #tpu.memory_space<vmem>>, vector<8x1024xf32>,
    %c0_122 = arith.constant 0 : index
    %c129_123 = arith.constant 129 : index
    %138 = vector.load %arg9[%c0_122, %c129_123] : memref<8x1280xf32, #tpu.memory_space<vmem>>, vector<8x1024xf32>
    %cst_124 = arith.constant 0.000000e+00 : f32
    %139 = vector.shape_cast %6 : vector<1x1024xi1> to vector<1x1024xi1>
    %140 = vector.broadcast %139 : vector<1x1024xi1> to vector<8x1024xi1>
    %141 = vector.broadcast %cst_124 : f32 to vector<8x1024xf32>
    %142 = arith.select %140, %138, %141 : vector<8x1024xi1>, vector<8x1024xf32>
    %c40_125 = arith.constant 40 : index
    %c0_126 = arith.constant 0 : index
    %143 = vector.load %arg10[%c40_125, %c0_126] : memref<72x1024xf32, #tpu.memory_space<vmem>>, vector<8x1024xf32>
    tpu.vector_store %arg10[%c40_125, %c0_126], %142 {strides = array<i32>} : memref<72x1024xf32, #tpu.memory_space<vmem>>, vector<8x1024xf32>,
    %c0_127 = arith.constant 0 : index
    %c159_128 = arith.constant 159 : index
    %144 = vector.load %arg9[%c0_127, %c159_128] : memref<8x1280xf32, #tpu.memory_space<vmem>>, vector<8x1024xf32>
    %cst_129 = arith.constant 0.000000e+00 : f32
    %145 = vector.shape_cast %4 : vector<1x1024xi1> to vector<1x1024xi1>
    %146 = vector.broadcast %145 : vector<1x1024xi1> to vector<8x1024xi1>
    %147 = vector.broadcast %cst_129 : f32 to vector<8x1024xf32>
    %148 = arith.select %146, %144, %147 : vector<8x1024xi1>, vector<8x1024xf32>
    %c48_130 = arith.constant 48 : index
    %c0_131 = arith.constant 0 : index
    %149 = vector.load %arg10[%c48_130, %c0_131] : memref<72x1024xf32, #tpu.memory_space<vmem>>, vector<8x1024xf32>
    tpu.vector_store %arg10[%c48_130, %c0_131], %148 {strides = array<i32>} : memref<72x1024xf32, #tpu.memory_space<vmem>>, vector<8x1024xf32>,
    %c0_132 = arith.constant 0 : index
    %c160_133 = arith.constant 160 : index
    %150 = vector.load %arg9[%c0_132, %c160_133] : memref<8x1280xf32, #tpu.memory_space<vmem>>, vector<8x1024xf32>
    %c56_134 = arith.constant 56 : index
    %c0_135 = arith.constant 0 : index
    %151 = vector.load %arg10[%c56_134, %c0_135] : memref<72x1024xf32, #tpu.memory_space<vmem>>, vector<8x1024xf32>
    tpu.vector_store %arg10[%c56_134, %c0_135], %150 {strides = array<i32>} : memref<72x1024xf32, #tpu.memory_space<vmem>>, vector<8x1024xf32>,
    %c0_136 = arith.constant 0 : index
    %c161_137 = arith.constant 161 : index
    %152 = vector.load %arg9[%c0_136, %c161_137] : memref<8x1280xf32, #tpu.memory_space<vmem>>, vector<8x1024xf32>
    %cst_138 = arith.constant 0.000000e+00 : f32
    %153 = vector.shape_cast %6 : vector<1x1024xi1> to vector<1x1024xi1>
    %154 = vector.broadcast %153 : vector<1x1024xi1> to vector<8x1024xi1>
    %155 = vector.broadcast %cst_138 : f32 to vector<8x1024xf32>
    %156 = arith.select %154, %152, %155 : vector<8x1024xi1>, vector<8x1024xf32>
    %c64_139 = arith.constant 64 : index
    %c0_140 = arith.constant 0 : index
    %157 = vector.load %arg10[%c64_139, %c0_140] : memref<72x1024xf32, #tpu.memory_space<vmem>>, vector<8x1024xf32>
    tpu.vector_store %arg10[%c64_139, %c0_140], %156 {strides = array<i32>} : memref<72x1024xf32, #tpu.memory_space<vmem>>, vector<8x1024xf32>,
    %c0_141 = arith.constant 0 : index
    %c0_142 = arith.constant 0 : index
    %158 = vector.load %arg4[%c0_141, %c0_142] : memref<8x72xf32, #tpu.memory_space<vmem>>, vector<8x72xf32>
    %c0_143 = arith.constant 0 : index
    %c0_144 = arith.constant 0 : index
    %159 = vector.load %arg10[%c0_143, %c0_144] : memref<72x1024xf32, #tpu.memory_space<vmem>>, vector<72x1024xf32>
    %cst_145 = arith.constant dense<0.000000e+00> : vector<8x1024xf32>
    %160 = tpu.matmul %158, %159, %cst_145 {dimension_numbers = #tpu.dot_dimension_numbers<[1], [0], [0], [1], [0, 0, 1, 1], [], []>} : vector<8x72xf32>, vector<72x1024xf32>, vector<8x1024xf32> -> vector<8x1024xf32>
    %c0_146 = arith.constant 0 : index
    %c0_147 = arith.constant 0 : index
    %161 = vector.load %arg7[%c0_146, %c0_147] : memref<8x1xf32, #tpu.memory_space<vmem>>, vector<8x1xf32>
    %162 = vector.broadcast %161 : vector<8x1xf32> to vector<8x1024xf32>
    %163 = arith.addf %160, %162 : vector<8x1024xf32>
    %cst_148 = arith.constant 0.000000e+00 : f32
    %164 = vector.broadcast %cst_148 : f32 to vector<8x1024xf32>
    %165 = arith.cmpf oge, %163, %164 : vector<8x1024xf32>
    %cst_149 = arith.constant 2.000000e-01 : f32
    %166 = vector.broadcast %cst_149 : f32 to vector<8x1024xf32>
    %167 = arith.mulf %166, %163 : vector<8x1024xf32>
    %168 = arith.select %165, %163, %167 : vector<8x1024xi1>, vector<8x1024xf32>
    %c0_150 = arith.constant 0 : index
    %c0_151 = arith.constant 0 : index
    %c0_152 = arith.constant 0 : index
    %169 = vector.load %arg8[%c0_150, %c0_151, %c0_152] : memref<1x8x1024xf32, #tpu.memory_space<vmem>>, vector<1x8x1024xf32>
    %170 = vector.shape_cast %169 : vector<1x8x1024xf32> to vector<8x1024xf32>
    %171 = vector.shape_cast %168 : vector<8x1024xf32> to vector<1x8x1024xf32>
    tpu.vector_store %arg8[%c0_150, %c0_151, %c0_152], %171 {strides = array<i32>} : memref<1x8x1024xf32, #tpu.memory_space<vmem>>, vector<1x8x1024xf32>,
    return
  }
  func.func @transform_0(%arg0: i32) -> (i32, i32, i32) {
    %c0_i32 = arith.constant 0 : i32
    %c0_i32_0 = arith.constant 0 : i32
    %c0_i32_1 = arith.constant 0 : i32
    return %arg0, %c0_i32, %c0_i32_0 : i32, i32, i32
  }
  func.func @transform_1(%arg0: i32) -> (i32, i32) {
    %c0_i32 = arith.constant 0 : i32
    %c0_i32_0 = arith.constant 0 : i32
    %c0_i32_1 = arith.constant 0 : i32
    return %c0_i32, %c0_i32_0 : i32, i32
  }
  func.func @transform_2(%arg0: i32) -> (i32, i32) {
    %c0_i32 = arith.constant 0 : i32
    %c0_i32_0 = arith.constant 0 : i32
    %c0_i32_1 = arith.constant 0 : i32
    return %c0_i32, %c0_i32_0 : i32, i32
  }
  func.func @transform_3(%arg0: i32) -> (i32, i32) {
    %c0_i32 = arith.constant 0 : i32
    %c0_i32_0 = arith.constant 0 : i32
    %c0_i32_1 = arith.constant 0 : i32
    return %c0_i32, %c0_i32_0 : i32, i32
  }
  func.func @transform_4(%arg0: i32) -> (i32, i32) {
    %c0_i32 = arith.constant 0 : i32
    %c0_i32_0 = arith.constant 0 : i32
    %c0_i32_1 = arith.constant 0 : i32
    return %c0_i32, %c0_i32_0 : i32, i32
  }
  func.func @transform_5(%arg0: i32) -> (i32, i32) {
    %c0_i32 = arith.constant 0 : i32
    %c0_i32_0 = arith.constant 0 : i32
    %c0_i32_1 = arith.constant 0 : i32
    return %c0_i32, %c0_i32_0 : i32, i32
  }
  func.func @transform_6(%arg0: i32) -> (i32, i32) {
    %c0_i32 = arith.constant 0 : i32
    %c0_i32_0 = arith.constant 0 : i32
    %c0_i32_1 = arith.constant 0 : i32
    return %c0_i32, %c0_i32_0 : i32, i32
  }
  func.func @transform_7(%arg0: i32) -> (i32, i32, i32) {
    %c0_i32 = arith.constant 0 : i32
    %c0_i32_0 = arith.constant 0 : i32
    %c0_i32_1 = arith.constant 0 : i32
    return %arg0, %c0_i32, %c0_i32_0 : i32, i32, i32
  }
}

</mosaic_0001>

<bundles_post_ra>
// kernel: decoder_forward.1
= control target key start
LH: loop header
LB: loop body
LE: loop exit
PB: predicated region body
PF: predicated region fallthrough
CT: control target
= control target key end

     0   :  { %s3434_s24 = smov 0   ;;  %s4836_s0 = inlined_call_operand.vmem [shape: f32[2,8,1280], index: 0, kind: input, shape index: {}]   ;;  %s4837_s1 = inlined_call_operand.vmem [shape: f32[8,72], index: 1, kind: input, shape index: {}]   ;;  %s4838_s2 = inlined_call_operand.vmem [shape: f32[8,72], index: 2, kind: input, shape index: {}]   ;;  %s4839_s3 = inlined_call_operand.vmem [shape: f32[8,72], index: 3, kind: input, shape index: {}]   ;;  %s4840_s4 = inlined_call_operand.vmem [shape: f32[8,1], index: 4, kind: input, shape index: {}]   ;;  %s4841_s5 = inlined_call_operand.vmem [shape: f32[8,1], index: 5, kind: input, shape index: {}]   ;;  %s4842_s6 = inlined_call_operand.vmem [shape: f32[8,1], index: 6, kind: input, shape index: {}]   ;;  %s4843_s7 = inlined_call_operand.vmem [shape: f32[2,8,1024], index: 7, kind: output, shape index: {}]  }
   0x1 LB: > { %s3212_s25 = sadd.s32 4294967295, %s3382_s24   ;;  %p3216_p0 = scmp.ge.s32.totalorder %s3382_s24, 1  ;;  %s3382_s24 = sphi %s3434_s24, %s17_s24  }
   0x2   : > { %p237_p1 = scmp.lt.s32.totalorder %s3382_s24, 3 }
   0x4   : > { %p238_p2 = pnand %p3216_p0, %p237_p1 }
   0x5   : > { %p269_p3 = scmp.lt.s32.totalorder (!%p238_p2), %s3212_s25, 1  ;;  %s3384_s30 = smov (!%p238_p2), 95  }
   0x6   : > { %241 = sbr.rel (%p238_p2) target bundleno = 1233 (0x4d1), region = 48  ;;  %s3385_s8 = smov (!%p238_p2), 96  }
   0x7   : > { %s3386_s9 = smov (!%p238_p2), 97   ;;  %s3387_s10 = smov (!%p238_p2), 127  }
   0x8   : > { %s3388_s11 = smov (!%p238_p2), 1   ;;  %s3389_s12 = smov (!%p238_p2), 31  }
   0x9   : > { %s3390_s13 = smov (!%p238_p2), 32   ;;  %s3392_s14 = smov (!%p238_p2), 33  }
   0xb   : > { %s5028_s25 = smov (!%p269_p3, %s3212_s25), 1  ;;  %v3391_v6 = vmov 0.0   ;;  %v279_v11 = vlaneseq  ;;  %vm4852_vm1 = vcmask 777216   ;;  %vm4850_vm3 = vcmask 785408   ;;  %v931_v51 = vld [vmem:[%s4840_s4] sm:$0xff] }
   0xc   : > { %s3355_s26 = smul.u32 80, %s5028_s25  ;;  %1005 = vmatprep.mubr.f32.mxu0 %v3391_v6  ;;  %1076 = vmatprep.mubr.f32.mxu1 %v3391_v6  ;;  %v4871_v36 = vmov 0  ;;  %vm4848_vm6 = vcmask 793600   ;;  %v3393_v41 = vmov 0   ;;  %vm4849_vm7 = vcmask 1039360   ;;  %v4650_v22 = vld [vmem:[%s4839_s3] sm:$0xff] }
   0xd   : > { %v3579_v12 = vand.u32 127, %v279_v11  ;;  %3374 = vset.pattern.permute.xlu0 %v3393_v41  ;;  %3375 = vset.pattern.permute.xlu1 %v3393_v41  ;;  %vm4845_vm8 = vcmask 7168   ;;  %vm4846_vm9 = vcmask 252928   ;;  %vm4851_vm10 = vcmask 261120  }
   0xe   : > { %s3448_s29 = scalar_lea.vmem %s4836_s0, %s3355_s26  ;;  %vm4847_vm11 = vcmask 269312   ;;  %vm4844_vm12 = vcmask 588800  }
   0xf   : > { %v3451_v0 = vld [vmem:[%s3448_s29 + $0x10] sm:$0xff]  ;;  %v3454_v1 = vld [vmem:[%s3448_s29 + $0x8] sm:$0xff]  ;;  %v3461_v2 = vld [vmem:[%s3448_s29 + $0x18] sm:$0xff]  ;;  %v3585_v13 = vadd.s32 128, %v3579_v12  ;;  %v288_v17 = vand.u32 31, %v3579_v12  ;;  %v3604_v19 = vadd.s32 384, %v3579_v12 }
  0x10   : > { %809 = vrot.lane.b32.xlu0 %v3451_v0, %s3384_s30  ;;  %807 = vrot.lane.b32.xlu1 %v3454_v1, %s3384_s30  ;;  %v3468_v3 = vld [vmem:[%s3448_s29 + $0x20] sm:$0xff]  ;;  %v3475_v4 = vld [vmem:[%s3448_s29 + $0x28] sm:$0xff]  ;;  %v3614_v24 = vadd.s32 256, %v3579_v12 }
  0x11   : > { %v521_v5 = vld [vmem:[%s3448_s29] sm:$0xff]  ;;  %v3545_v7 = vld [vmem:[%s3448_s29 + $0x30] sm:$0xff]  ;;  %v3548_v8 = vld [vmem:[%s3448_s29 + $0x38] sm:$0xff]  ;;  %v289_v14 = vand.u32 31, %v3585_v13  ;;  %vm3608_vm2 = vcmp.ne.s32.totalorder %v288_v17, 31  ;;  %v291_v26 = vand.u32 31, %v3604_v19 }
  0x12   : > { %v3559_v9 = vld [vmem:[%s3448_s29 + $0x40] sm:$0xff]  ;;  %v797_v10 = vld [vmem:[%s3448_s29 + $0x48] sm:$0xff]  ;;  %v290_v30 = vand.u32 31, %v3614_v24  ;;  %s3234_s29 = sshll.u32 %s5028_s25, 6 }
  0x13   : > { %vm3599_vm0 = vcmp.ne.s32.totalorder %v289_v14, 31  ;;  %vm3634_vm4 = vcmp.ne.s32.totalorder %v291_v26, 31 }
  0x14   : > { %811 = vrot.lane.b32.xlu0 %v3461_v2, %s3384_s30  ;;  %748 = vrot.lane.b32.xlu1 %v3451_v0, %s3385_s8  ;;  %vm3645_vm5 = vcmp.ne.s32.totalorder %v290_v30, 31 }
  0x15   : > { %v4872_v36 = vsel %vm3645_vm5, 4294967295, %v4871_v36 }
  0x18   : > { %750 = vrot.lane.b32.xlu0 %v3461_v2, %s3385_s8  ;;  %813 = vrot.lane.b32.xlu1 %v3468_v3, %s3384_s30 }
  0x1c   : > { %815 = vrot.lane.b32.xlu0 %v3475_v4, %s3384_s30  ;;  %746 = vrot.lane.b32.xlu1 %v3454_v1, %s3385_s8 }
  0x20   : > { %689 = vrot.lane.b32.xlu1 %v3461_v2, %s3386_s9  ;;  %687 = vrot.lane.b32.xlu0 %v3451_v0, %s3386_s9 }
  0x24   : > { %754 = vrot.lane.b32.xlu1 %v3475_v4, %s3385_s8  ;;  %752 = vrot.lane.b32.xlu0 %v3468_v3, %s3385_s8 }
  0x28   : > { %685 = vrot.lane.b32.xlu0 %v3454_v1, %s3386_s9  ;;  %618 = vrot.lane.b32.xlu1 %v3451_v0, %s3387_s10 }
  0x2c   : > { %620 = vrot.lane.b32.xlu0 %v3461_v2, %s3387_s10  ;;  %691 = vrot.lane.b32.xlu1 %v3468_v3, %s3386_s9 }
  0x30   : > { %693 = vrot.lane.b32.xlu0 %v3475_v4, %s3386_s9  ;;  %616 = vrot.lane.b32.xlu1 %v3454_v1, %s3387_s10 }
  0x34   : > { %622 = vrot.lane.b32.xlu0 %v3468_v3, %s3387_s10  ;;  %624 = vrot.lane.b32.xlu1 %v3475_v4, %s3387_s10 }
  0x38   : > { %543 = vrot.lane.b32.xlu1 %v3451_v0, %s3388_s11  ;;  %541 = vrot.lane.b32.xlu0 %v3454_v1, %s3388_s11 }
  0x3c   : > { %539 = vrot.lane.b32.xlu0 %v521_v5, %s3388_s11  ;;  %472 = vrot.lane.b32.xlu1 %v3454_v1, %s3389_s12 }
  0x40   : > { %474 = vrot.lane.b32.xlu0 %v3451_v0, %s3389_s12  ;;  %545 = vrot.lane.b32.xlu1 %v3461_v2, %s3388_s11 }
  0x44   : > { %547 = vrot.lane.b32.xlu0 %v3468_v3, %s3388_s11  ;;  %470 = vrot.lane.b32.xlu1 %v521_v5, %s3389_s12 }
  0x48   : > { %397 = vrot.lane.b32.xlu1 %v3451_v0, %s3390_s13  ;;  %395 = vrot.lane.b32.xlu0 %v3454_v1, %s3390_s13 }
  0x4c   : > { %478 = vrot.lane.b32.xlu1 %v3468_v3, %s3389_s12  ;;  %476 = vrot.lane.b32.xlu0 %v3461_v2, %s3389_s12 }
  0x50   : > { %393 = vrot.lane.b32.xlu0 %v521_v5, %s3390_s13  ;;  %334 = vrot.lane.b32.xlu1 %v3454_v1, %s3392_s14 }
  0x54   : > { %336 = vrot.lane.b32.xlu0 %v3451_v0, %s3392_s14  ;;  %399 = vrot.lane.b32.xlu1 %v3461_v2, %s3390_s13 }
  0x58   : > { %401 = vrot.lane.b32.xlu0 %v3468_v3, %s3390_s13  ;;  %332 = vrot.lane.b32.xlu1 %v521_v5, %s3392_s14 }
  0x5c   : > { %338 = vrot.lane.b32.xlu0 %v3461_v2, %s3392_s14  ;;  %340 = vrot.lane.b32.xlu1 %v3468_v3, %s3392_s14 }
  0x60   : > { %817 = vrot.lane.b32.xlu0 %v3545_v7, %s3384_s30  ;;  %819 = vrot.lane.b32.xlu1 %v3548_v8, %s3384_s30 }
  0x64   : > { %756 = vrot.lane.b32.xlu0 %v3545_v7, %s3385_s8  ;;  %758 = vrot.lane.b32.xlu1 %v3548_v8, %s3385_s8 }
  0x68   : > { %821 = vrot.lane.b32.xlu0 %v3559_v9, %s3384_s30  ;;  %823 = vrot.lane.b32.xlu1 %v797_v10, %s3384_s30 }
  0x6c   : > { %695 = vrot.lane.b32.xlu0 %v3545_v7, %s3386_s9  ;;  %697 = vrot.lane.b32.xlu1 %v3548_v8, %s3386_s9 }
  0x70   : > { %760 = vrot.lane.b32.xlu0 %v3559_v9, %s3385_s8  ;;  %762 = vrot.lane.b32.xlu1 %v797_v10, %s3385_s8 }
  0x74   : > { %626 = vrot.lane.b32.xlu0 %v3545_v7, %s3387_s10  ;;  %628 = vrot.lane.b32.xlu1 %v3548_v8, %s3387_s10 }
  0x78   : > { %699 = vrot.lane.b32.xlu0 %v3559_v9, %s3386_s9  ;;  %701 = vrot.lane.b32.xlu1 %v797_v10, %s3386_s9 }
  0x7c   : > { %630 = vrot.lane.b32.xlu0 %v3559_v9, %s3387_s10  ;;  %632 = vrot.lane.b32.xlu1 %v797_v10, %s3387_s10 }
  0x80   : > { %549 = vrot.lane.b32.xlu0 %v3475_v4, %s3388_s11  ;;  %551 = vrot.lane.b32.xlu1 %v3545_v7, %s3388_s11 }
  0x82   : > { %v810_v15 = vpop.permute.xlu0 %809  ;;  %v808_v16 = vpop.permute.xlu1 %807 }
  0x83   : > { %v826_v25 = vsel %vm4852_vm1, %v808_v16, %v810_v15 }
  0x84   : > { %480 = vrot.lane.b32.xlu0 %v3475_v4, %s3389_s12  ;;  %482 = vrot.lane.b32.xlu1 %v3545_v7, %s3389_s12 }
  0x86   : > { %v812_v20 = vpop.permute.xlu0 %811  ;;  %v749_v21 = vpop.permute.xlu1 %748 }
  0x87   : > { %v827_v23 = vsel %vm4852_vm1, %v810_v15, %v812_v20 }
  0x88   : > { %3235 = vmatprep.subr.msk.mxu0 %vm3599_vm0, %v827_v23  ;;  %553 = vrot.lane.b32.xlu0 %v3548_v8, %s3388_s11 }
  0x89   : > { %555 = vrot.lane.b32.xlu1 %v3559_v9, %s3388_s11  ;;  %3236 = vmatpush1.msk.msra.mxu0 %vm3608_vm2, %v826_v25 }
  0x8a   : > { %v751_v27 = vpop.permute.xlu0 %750  ;;  %v814_v28 = vpop.permute.xlu1 %813 }
  0x8b   : > { %v766_v29 = vsel %vm4850_vm3, %v749_v21, %v751_v27  ;;  %v828_v37 = vsel %vm4852_vm1, %v812_v20, %v814_v28 }
  0x8c   : > { %957 = vmatprep.subr.mxu0 %v766_v29  ;;  %403 = vrot.lane.b32.xlu0 %v3475_v4, %s3390_s13 }
  0x8d   : > { %405 = vrot.lane.b32.xlu1 %v3545_v7, %s3390_s13 }
  0x8e   : > { %v3638_v32 = vpop.permute.xlu0 %815  ;;  %v747_v33 = vpop.permute.xlu1 %746 }
  0x8f   : > { %v765_v34 = vsel %vm4850_vm3, %v747_v33, %v749_v21  ;;  %v829_v35 = vsel %vm4852_vm1, %v814_v28, %v3638_v32 }
  0x90   : > { %958 = vmatpush1.msra.mxu0 %v765_v34  ;;  %3241 = vmatprep.subr.msk.mxu1 %vm3634_vm4, %v829_v35 }
  0x91   : > { %484 = vrot.lane.b32.xlu0 %v3548_v8, %s3389_s12  ;;  %486 = vrot.lane.b32.xlu1 %v3559_v9, %s3389_s12 }
  0x92   : > { %3242 = vmatpush1.msk.msra.mxu1 %vm3645_vm5, %v828_v37  ;;  %v690_v38 = vpop.permute.xlu1 %689  ;;  %v688_v39 = vpop.permute.xlu0 %687 }
  0x93   : > { %v705_v40 = vsel %vm4848_vm6, %v688_v39, %v690_v38 }
  0x94   : > { %959 = vmatprep.subr.mxu0 %v705_v40 }
  0x95   : > { %342 = vrot.lane.b32.xlu0 %v3475_v4, %s3392_s14  ;;  %344 = vrot.lane.b32.xlu1 %v3545_v7, %s3392_s14 }
  0x96   : > { %v3663_v42 = vpop.permute.xlu1 %754  ;;  %v753_v43 = vpop.permute.xlu0 %752 }
  0x97   : > { %v768_v44 = vsel %vm4850_vm3, %v753_v43, %v3663_v42  ;;  %v767_v45 = vsel %vm4850_vm3, %v751_v27, %v753_v43 }
  0x98   : > { %1028 = vmatprep.subr.mxu1 %v768_v44  ;;  %v3746_v44 = vadd.s32 640, %v3579_v12 }
  0x99   : > { %407 = vrot.lane.b32.xlu0 %v3548_v8, %s3390_s13  ;;  %409 = vrot.lane.b32.xlu1 %v3559_v9, %s3390_s13 }
  0x9a   : > { %1029 = vmatpush1.msra.mxu1 %v767_v45  ;;  %v686_v46 = vpop.permute.xlu0 %685  ;;  %v619_v47 = vpop.permute.xlu1 %618 }
  0x9b   : > { %v704_v48 = vsel %vm4848_vm6, %v686_v46, %v688_v39 }
  0x9c   : > { %960 = vmatpush1.msra.mxu0 %v704_v48  ;;  %v3756_v48 = vadd.s32 512, %v3579_v12 }
  0x9d   : > { %346 = vrot.lane.b32.xlu0 %v3548_v8, %s3392_s14  ;;  %348 = vrot.lane.b32.xlu1 %v3559_v9, %s3392_s14 }
  0x9e   : > { %v621_v49 = vpop.permute.xlu0 %620  ;;  %v692_v50 = vpop.permute.xlu1 %691 }
  0x9f   : > { %v636_v52 = vsel %vm4849_vm7, %v619_v47, %v621_v49  ;;  %v706_v57 = vsel %vm4848_vm6, %v690_v38, %v692_v50 }
  0xa0   : > { %3237 = vmatprep.subr.msk.mxu0 %vm3599_vm0, %v636_v52  ;;  %v293_v52 = vand.u32 31, %v3746_v44 }
  0xa1   : > { %934 = vperm.xlu0 %3374, %v931_v51   ;;  %1419 = vrot.lane.b32.xlu1 %v3391_v6, %s3389_s12 }
  0xa2   : > { %v3685_v53 = vpop.permute.xlu0 %693  ;;  %v617_v54 = vpop.permute.xlu1 %616  ;;  %vm3774_vm13 = vcmp.ne.s32.totalorder %v293_v52, 31 }
  0xa3   : > { %v635_v55 = vsel %vm4849_vm7, %v617_v54, %v619_v47  ;;  %v707_v56 = vsel %vm4848_vm6, %v692_v50, %v3685_v53  ;;  %v3753_v47 = vld [vmem:[%s4837_s1] sm:$0xff] }
  0xa4   : > { %3238 = vmatpush1.msk.msra.mxu0 %vm3608_vm2, %v635_v55  ;;  %1030 = vmatprep.subr.mxu1 %v707_v56  ;;  %v292_v56 = vand.u32 31, %v3756_v48 }
  0xa5   : > { %1031 = vmatpush1.msra.mxu1 %v706_v57  ;;  %963 = vmatprep.subr.mxu0 %v3451_v0 }
  0xa6   : > { %v623_v58 = vpop.permute.xlu0 %622  ;;  %v3694_v59 = vpop.permute.xlu1 %624  ;;  %964 = vmatpush1.msra.mxu0 %v3454_v1  ;;  %1291 = vrot.lane.b32.xlu1 %v3391_v6, %s3392_s14  ;;  %vm3785_vm14 = vcmp.ne.s32.totalorder %v292_v56, 31 }
  0xa7   : > { %v638_v60 = vsel %vm4849_vm7, %v623_v58, %v3694_v59  ;;  %v637_v61 = vsel %vm4849_vm7, %v621_v49, %v623_v58  ;;  %1487 = vrot.lane.b32.xlu0 %v3391_v6, %s3388_s11 }
  0xa8   : > { %3243 = vmatprep.subr.msk.mxu1 %vm3634_vm4, %v638_v60  ;;  %v4873_v60 = vmov 0 }
  0xa9   : > { %3244 = vmatpush1.msk.msra.mxu1 %vm3645_vm5, %v637_v61  ;;  %v4874_v60 = vsel %vm3774_vm13, 4294967295, %v4873_v60  ;;  %v3779_v61 = vadd.s32 896, %v3579_v12 }
  0xaa   : > { %v544_v62 = vpop.permute.xlu1 %543  ;;  %v542_v63 = vpop.permute.xlu0 %541  ;;  %1034 = vmatprep.subr.mxu1 %v3468_v3  ;;  %1783 = vrot.lane.b32.xlu1 %v3391_v6, %s3384_s30 }
  0xab   : > { %v559_v0 = vsel %vm4845_vm8, %v542_v63, %v544_v62  ;;  %1035 = vmatpush1.msra.mxu1 %v3461_v2  ;;  %1359 = vrot.lane.b32.xlu0 %v3391_v6, %s3390_s13 }
  0xac   : > { %965 = vmatprep.subr.mxu0 %v559_v0 }
  0xae   : > { %v540_v1 = vpop.permute.xlu0 %539  ;;  %v473_v5 = vpop.permute.xlu1 %472  ;;  %1723 = vrot.lane.b32.xlu1 %v3391_v6, %s3385_s8 }
  0xaf   : > { %v558_v10 = vsel %vm4845_vm8, %v540_v1, %v542_v63  ;;  %v3790_v1 = vadd.s32 768, %v3579_v12 }
  0xb0   : > { %966 = vmatpush1.msra.mxu0 %v558_v10 }
  0xb2   : > { %v475_v3 = vpop.permute.xlu0 %474  ;;  %v546_v11 = vpop.permute.xlu1 %545  ;;  %1655 = vrot.lane.b32.xlu1 %v3391_v6, %s3386_s9 }
  0xb3   : > { %v490_v2 = vsel %vm4846_vm9, %v473_v5, %v475_v3  ;;  %v560_v23 = vsel %vm4845_vm8, %v544_v62, %v546_v11 }
  0xb4   : > { %3239 = vmatprep.subr.msk.mxu0 %vm3599_vm0, %v490_v2 }
  0xb6   : > { %v3723_v15 = vpop.permute.xlu0 %547  ;;  %v471_v16 = vpop.permute.xlu1 %470  ;;  %1587 = vrot.lane.b32.xlu1 %v3391_v6, %s3387_s10 }
  0xb7   : > { %v489_v20 = vsel %vm4846_vm9, %v471_v16, %v473_v5  ;;  %v561_v21 = vsel %vm4845_vm8, %v546_v11, %v3723_v15  ;;  %v294_v16 = vand.u32 31, %v3790_v1 }
  0xb8   : > { %3240 = vmatpush1.msk.msra.mxu0 %vm3608_vm2, %v489_v20  ;;  %1036 = vmatprep.subr.mxu1 %v561_v21 }
  0xb9   : > { %1037 = vmatpush1.msra.mxu1 %v560_v23 }
  0xba   : > { %v398_v25 = vpop.permute.xlu1 %397  ;;  %v396_v27 = vpop.permute.xlu0 %395 }
  0xbb   : > { %v413_v28 = vsel %vm4851_vm10, %v396_v27, %v398_v25 }
  0xbc   : > { %969 = vmatprep.subr.mxu0 %v413_v28 }
  0xbe   : > { %v3734_v29 = vpop.permute.xlu1 %478  ;;  %v477_v33 = vpop.permute.xlu0 %476 }
  0xbf   : > { %v492_v34 = vsel %vm4846_vm9, %v477_v33, %v3734_v29  ;;  %v491_v35 = vsel %vm4846_vm9, %v475_v3, %v477_v33  ;;  %v295_v3 = vand.u32 31, %v3779_v61 }
  0xc0   : > { %3245 = vmatprep.subr.msk.mxu1 %vm3634_vm4, %v492_v34 }
  0xc1   : > { %3246 = vmatpush1.msk.msra.mxu1 %vm3645_vm5, %v491_v35  ;;  %vm3807_vm15 = vcmp.ne.s32.totalorder %v295_v3, 31 }
  0xc2   : > { %v394_v37 = vpop.permute.xlu0 %393  ;;  %v335_v38 = vpop.permute.xlu1 %334 }
  0xc3   : > { %v412_v39 = vsel %vm4851_vm10, %v394_v37, %v396_v27 }
  0xc4   : > { %970 = vmatpush1.msra.mxu0 %v412_v39 }
  0xc6   : > { %v337_v40 = vpop.permute.xlu0 %336  ;;  %v400_v41 = vpop.permute.xlu1 %399 }
  0xc7   : > { %v352_v43 = vsel %vm4847_vm11, %v335_v38, %v337_v40  ;;  %v414_v51 = vsel %vm4851_vm10, %v398_v25, %v400_v41 }
  0xc8   : > { %971 = vmatprep.subr.mxu0 %v352_v43 }
  0xca   : > { %v3748_v45 = vpop.permute.xlu0 %401  ;;  %v333_v46 = vpop.permute.xlu1 %332 }
  0xcb   : > { %v351_v49 = vsel %vm4847_vm11, %v333_v46, %v335_v38  ;;  %v415_v50 = vsel %vm4851_vm10, %v400_v41, %v3748_v45 }
  0xcc   : > { %972 = vmatpush1.msra.mxu0 %v351_v49  ;;  %1040 = vmatprep.subr.mxu1 %v415_v50 }
  0xcd   : > { %1041 = vmatpush1.msra.mxu1 %v414_v51  ;;  %3220 = vmatmul.mubr.msk.f32.vlgmr.msra.gmra.mxu0 %vm4844_vm12, %v3753_v47 }
  0xce   : > { %v339_v54 = vpop.permute.xlu0 %338  ;;  %v3765_v55 = vpop.permute.xlu1 %340  ;;  %1147 = vmatprep.mubr.f32.mxu0 %v3391_v6 }
  0xcf   : > { %v354_v57 = vsel %vm4847_vm11, %v339_v54, %v3765_v55  ;;  %v353_v58 = vsel %vm4847_vm11, %v337_v40, %v339_v54 }
  0xd0   : > { %1042 = vmatprep.subr.mxu1 %v354_v57 }
  0xd1   : > { %1043 = vmatpush1.msra.mxu1 %v353_v58 }
  0xd2   : > { %v818_v62 = vpop.permute.xlu0 %817  ;;  %3221 = vmatmul.mubr.msk.f32.vlgmr.msra.gmra.mxu1 %vm4844_vm12, %v3753_v47  ;;  %v820_v63 = vpop.permute.xlu1 %819  ;;  %vm3813_vm12 = vcmp.ne.s32.totalorder %v294_v16, 31 }
  0xd3   : > { %v830_v5 = vsel %vm4852_vm1, %v3638_v32, %v818_v62  ;;  %v831_v10 = vsel %vm4852_vm1, %v818_v62, %v820_v63  ;;  %1218 = vmatprep.mubr.f32.mxu1 %v3391_v6 }
  0xd4   : > { %3247 = vmatprep.subr.msk.mxu0 %vm3774_vm13, %v831_v10 }
  0xd5   : > { %3248 = vmatpush1.msk.msra.mxu0 %vm3785_vm14, %v830_v5 }
  0xd6   : > { %v757_v11 = vpop.permute.xlu0 %756  ;;  %v759_v2 = vpop.permute.xlu1 %758 }
  0xd7   : > { %v770_v20 = vsel %vm4850_vm3, %v757_v11, %v759_v2  ;;  %v769_v32 = vsel %vm4850_vm3, %v3663_v42, %v757_v11 }
  0xd8   : > { %1099 = vmatprep.subr.mxu0 %v770_v20 }
  0xd9   : > { %1100 = vmatpush1.msra.mxu0 %v769_v32 }
  0xda   : > { %v822_v23 = vpop.permute.xlu0 %821  ;;  %v824_v25 = vpop.permute.xlu1 %823 }
  0xdb   : > { %v832_v28 = vsel %vm4852_vm1, %v820_v63, %v822_v23  ;;  %v833_v42 = vsel %vm4852_vm1, %v822_v23, %v824_v25 }
  0xdc   : > { %3253 = vmatprep.subr.msk.mxu1 %vm3807_vm15, %v833_v42 }
  0xdd   : > { %3254 = vmatpush1.msk.msra.mxu1 %vm3813_vm12, %v832_v28 }
  0xde   : > { %v696_v33 = vpop.permute.xlu0 %695  ;;  %v698_v34 = vpop.permute.xlu1 %697 }
  0xdf   : > { %v709_v35 = vsel %vm4848_vm6, %v696_v33, %v698_v34  ;;  %v708_v37 = vsel %vm4848_vm6, %v3685_v53, %v696_v33 }
  0xe0   : > { %1101 = vmatprep.subr.mxu0 %v709_v35 }
  0xe1   : > { %1102 = vmatpush1.msra.mxu0 %v708_v37 }
  0xe2   : > { %v761_v38 = vpop.permute.xlu0 %760  ;;  %v763_v39 = vpop.permute.xlu1 %762 }
  0xe3   : > { %v772_v40 = vsel %vm4850_vm3, %v761_v38, %v763_v39  ;;  %v771_v41 = vsel %vm4850_vm3, %v759_v2, %v761_v38 }
  0xe4   : > { %1170 = vmatprep.subr.mxu1 %v772_v40 }
  0xe5   : > { %1171 = vmatpush1.msra.mxu1 %v771_v41 }
  0xe6   : > { %v627_v43 = vpop.permute.xlu0 %626  ;;  %v629_v46 = vpop.permute.xlu1 %628 }
  0xe7   : > { %v639_v49 = vsel %vm4849_vm7, %v3694_v59, %v627_v43  ;;  %v640_v50 = vsel %vm4849_vm7, %v627_v43, %v629_v46 }
  0xe8   : > { %3249 = vmatprep.subr.msk.mxu0 %vm3774_vm13, %v640_v50 }
  0xe9   : > { %3250 = vmatpush1.msk.msra.mxu0 %vm3785_vm14, %v639_v49 }
  0xea   : > { %v700_v53 = vpop.permute.xlu0 %699  ;;  %v702_v51 = vpop.permute.xlu1 %701  ;;  %1105 = vmatprep.subr.mxu0 %v3545_v7 }
  0xeb   : > { %v711_v54 = vsel %vm4848_vm6, %v700_v53, %v702_v51  ;;  %v710_v57 = vsel %vm4848_vm6, %v698_v34, %v700_v53  ;;  %1106 = vmatpush1.msra.mxu0 %v3475_v4 }
  0xec   : > { %1172 = vmatprep.subr.mxu1 %v711_v54 }
  0xed   : > { %1173 = vmatpush1.msra.mxu1 %v710_v57 }
  0xee   : > { %v631_v59 = vpop.permute.xlu0 %630  ;;  %v633_v58 = vpop.permute.xlu1 %632 }
  0xef   : > { %v641_v62 = vsel %vm4849_vm7, %v629_v46, %v631_v59  ;;  %v642_v63 = vsel %vm4849_vm7, %v631_v59, %v633_v58 }
  0xf0   : > { %3255 = vmatprep.subr.msk.mxu1 %vm3807_vm15, %v642_v63 }
  0xf1   : > { %3256 = vmatpush1.msk.msra.mxu1 %vm3813_vm12, %v641_v62 }
  0xf2   : > { %v550_v7 = vpop.permute.xlu0 %549  ;;  %v552_v5 = vpop.permute.xlu1 %551  ;;  %1176 = vmatprep.subr.mxu1 %v3559_v9 }
  0xf3   : > { %v563_v4 = vsel %vm4845_vm8, %v550_v7, %v552_v5  ;;  %v562_v10 = vsel %vm4845_vm8, %v3723_v15, %v550_v7  ;;  %1177 = vmatpush1.msra.mxu1 %v3548_v8 }
  0xf4   : > { %1107 = vmatprep.subr.mxu0 %v563_v4 }
  0xf5   : > { %1108 = vmatpush1.msra.mxu0 %v562_v10 }
  0xf6   : > { %v481_v11 = vpop.permute.xlu0 %480  ;;  %v483_v2 = vpop.permute.xlu1 %482 }
  0xf7   : > { %v493_v20 = vsel %vm4846_vm9, %v3734_v29, %v481_v11  ;;  %v494_v32 = vsel %vm4846_vm9, %v481_v11, %v483_v2 }
  0xf8   : > { %3251 = vmatprep.subr.msk.mxu0 %vm3774_vm13, %v494_v32 }
  0xf9   : > { %3252 = vmatpush1.msk.msra.mxu0 %vm3785_vm14, %v493_v20 }
  0xfa   : > { %v554_v9 = vpop.permute.xlu0 %553 }
  0xfb   : > { %v556_v23 = vpop.permute.xlu1 %555  ;;  %v564_v15 = vsel %vm4845_vm8, %v552_v5, %v554_v9 }
  0xfc   : > { %v565_v8 = vsel %vm4845_vm8, %v554_v9, %v556_v23  ;;  %vm4881_vm8 = vcmask 588800  }
  0xfd   : > { %1178 = vmatprep.subr.mxu1 %v565_v8 }
  0xfe   : > { %1179 = vmatpush1.msra.mxu1 %v564_v15  ;;  %v404_v25 = vpop.permute.xlu0 %403 }
  0xff   : > { %v406_v28 = vpop.permute.xlu1 %405  ;;  %v416_v29 = vsel %vm4851_vm10, %v3748_v45, %v404_v25 }
 0x100   : > { %v417_v42 = vsel %vm4851_vm10, %v404_v25, %v406_v28 }
 0x101   : > { %1111 = vmatprep.subr.mxu0 %v417_v42 }
 0x102   : > { %1112 = vmatpush1.msra.mxu0 %v416_v29 }
 0x103   : > { %v485_v33 = vpop.permute.xlu0 %484  ;;  %v487_v34 = vpop.permute.xlu1 %486 }
 0x104   : > { %v495_v35 = vsel %vm4846_vm9, %v483_v2, %v485_v33  ;;  %v496_v37 = vsel %vm4846_vm9, %v485_v33, %v487_v34  ;;  %vm4882_vm9 = vmmov %vm4881_vm8 }
 0x105   : > { %3257 = vmatprep.subr.msk.mxu1 %vm3807_vm15, %v496_v37 }
 0x106   : > { %3258 = vmatpush1.msk.msra.mxu1 %vm3813_vm12, %v495_v35 }
 0x107   : > { %v343_v38 = vpop.permute.xlu0 %342  ;;  %v345_v39 = vpop.permute.xlu1 %344 }
 0x108   : > { %v356_v45 = vsel %vm4847_vm11, %v343_v38, %v345_v39  ;;  %v355_v40 = vsel %vm4847_vm11, %v3765_v55, %v343_v38 }
 0x109   : > { %1113 = vmatprep.subr.mxu0 %v356_v45 }
 0x10a   : > { %1114 = vmatpush1.msra.mxu0 %v355_v40 }
 0x10b   : > { %v408_v41 = vpop.permute.xlu0 %407  ;;  %3222 = vmatmul.mubr.msk.f32.vlgmr.msra.gmra.mxu0 %vm4881_vm8, %v3753_v47  ;;  %v410_v43 = vpop.permute.xlu1 %409 }
 0x10c   : > { %v419_v46 = vsel %vm4851_vm10, %v408_v41, %v410_v43  ;;  %v418_v49 = vsel %vm4851_vm10, %v406_v28, %v408_v41  ;;  %1963 = vmatprep.mubr.f32.mxu0 %v3391_v6 }
 0x10d   : > { %1182 = vmatprep.subr.mxu1 %v419_v46 }
 0x10e   : > { %1183 = vmatpush1.msra.mxu1 %v418_v49 }
 0x10f   : > { %v347_v50 = vpop.permute.xlu0 %346  ;;  %v349_v53 = vpop.permute.xlu1 %348 }
 0x110   : > { %v358_v51 = vsel %vm4847_vm11, %v347_v50, %v349_v53  ;;  %v357_v55 = vsel %vm4847_vm11, %v345_v39, %v347_v50 }
 0x111   : > { %1184 = vmatprep.subr.mxu1 %v358_v51 }
 0x112   : > { %1185 = vmatpush1.msra.mxu1 %v357_v55 }
 0x113   : > { %3223 = vmatmul.mubr.msk.f32.vlgmr.msra.gmra.mxu1 %vm4882_vm9, %v3753_v47  ;;  %v3984_v38 = vpop.permute.xlu1 %1419 }
 0x114   : > { %2034 = vmatprep.mubr.f32.mxu1 %v3391_v6 }
 0x118   : > { %v3996_v40 = vpop.permute.xlu1 %1291 }
 0x11c   : > { %v3881_v54 = vpop.permute.xlu0 %934  ;;  %v4002_v43 = vpop.permute.xlu1 %1783 }
 0x120   : > { %v4013_v50 = vpop.permute.xlu1 %1723  ;;  %v4015_v53 = vpop.permute.xlu0 %1487 }
 0x124   : > { %v4023_v55 = vpop.permute.xlu1 %1655 }
 0x18d   : > { %v1007_v57 = vpop.f32.mrf.mxu0 }
 0x18e   : > { %v1008_v59 = vadd.f32 %v1007_v57, %v3881_v54  ;;  %v4035_v57 = vpop.permute.xlu1 %1587 }
 0x18f   : > { %v1009_v4 = vpop.f32.mrf.mxu0 }
 0x190   : > { %vm1225_vm8 = vcmp.ge.f32.partialorder %v1008_v59, 0.0  ;;  %v1233_v58 = vmul.f32 0.2, %v1008_v59  ;;  %v1010_v10 = vadd.f32 %v1009_v4, %v3881_v54 }
 0x192   : > { %v3884_v62 = vsel %vm1225_vm8, %v1008_v59, %v1233_v58  ;;  %v1078_v63 = vpop.f32.mrf.mxu1  ;;  %v1234_v11 = vmul.f32 0.2, %v1010_v10  ;;  %vm1226_vm9 = vcmp.ge.f32.partialorder %v1010_v10, 0.0 }
 0x193   : > { %v1079_v7 = vadd.f32 %v1078_v63, %v3881_v54  ;;  %1767 = vrot.lane.b32.xlu0 %v3884_v62, %s3384_s30 }
 0x194   : > { %v3916_v2 = vsel %vm1226_vm9, %v1010_v10, %v1234_v11  ;;  %v1080_v20 = vpop.f32.mrf.mxu1  ;;  %v1890_v11 = vld [vmem:[%s4841_s5] sm:$0xff] }
 0x195   : > { %vm1227_vm11 = vcmp.ge.f32.partialorder %v1079_v7, 0.0  ;;  %v1235_v5 = vmul.f32 0.2, %v1079_v7  ;;  %v1081_v32 = vadd.f32 %v1080_v20, %v3881_v54 }
 0x197   : > { %v3889_v47 = vsel %vm1227_vm11, %v1079_v7, %v1235_v5  ;;  %v1236_v9 = vmul.f32 0.2, %v1081_v32  ;;  %vm1228_vm11 = vcmp.ge.f32.partialorder %v1081_v32, 0.0 }
 0x198   : > { %1711 = vrot.lane.b32.xlu0 %v3889_v47, %s3385_s8  ;;  %1771 = vrot.lane.b32.xlu1 %v3889_v47, %s3384_s30 }
 0x199   : > { %v3939_v23 = vsel %vm1228_vm11, %v1081_v32, %v1236_v9 }
 0x19c   : > { %1639 = vrot.lane.b32.xlu0 %v3884_v62, %s3386_s9  ;;  %1707 = vrot.lane.b32.xlu1 %v3884_v62, %s3385_s8 }
 0x1a0   : > { %1575 = vrot.lane.b32.xlu0 %v3889_v47, %s3387_s10  ;;  %1643 = vrot.lane.b32.xlu1 %v3889_v47, %s3386_s9 }
 0x1a4   : > { %1489 = vrot.lane.b32.xlu0 %v3884_v62, %s3388_s11  ;;  %1571 = vrot.lane.b32.xlu1 %v3884_v62, %s3387_s10 }
 0x1a8   : > { %1361 = vrot.lane.b32.xlu0 %v3884_v62, %s3390_s13  ;;  %1421 = vrot.lane.b32.xlu1 %v3884_v62, %s3389_s12 }
 0x1ac   : > { %1493 = vrot.lane.b32.xlu0 %v3889_v47, %s3388_s11  ;;  %1293 = vrot.lane.b32.xlu1 %v3884_v62, %s3392_s14 }
 0x1b0   : > { %1425 = vrot.lane.b32.xlu0 %v3889_v47, %s3389_s12  ;;  %1769 = vrot.lane.b32.xlu1 %v3916_v2, %s3384_s30 }
 0x1b4   : > { %1365 = vrot.lane.b32.xlu0 %v3889_v47, %s3390_s13  ;;  %1709 = vrot.lane.b32.xlu1 %v3916_v2, %s3385_s8 }
 0x1b8   : > { %1297 = vrot.lane.b32.xlu0 %v3889_v47, %s3392_s14  ;;  %1573 = vrot.lane.b32.xlu1 %v3916_v2, %s3387_s10 }
 0x1bc   : > { %1641 = vrot.lane.b32.xlu0 %v3916_v2, %s3386_s9  ;;  %1491 = vrot.lane.b32.xlu1 %v3916_v2, %s3388_s11 }
 0x1c0   : > { %1423 = vrot.lane.b32.xlu0 %v3916_v2, %s3389_s12  ;;  %1363 = vrot.lane.b32.xlu1 %v3916_v2, %s3390_s13 }
 0x1c4   : > { %1295 = vrot.lane.b32.xlu0 %v3916_v2, %s3392_s14  ;;  %1773 = vrot.lane.b32.xlu1 %v3939_v23, %s3384_s30 }
 0x1c8   : > { %1713 = vrot.lane.b32.xlu0 %v3939_v23, %s3385_s8  ;;  %1495 = vrot.lane.b32.xlu1 %v3939_v23, %s3388_s11 }
 0x1cb   : > { %v1149_v15 = vpop.f32.mrf.mxu0 }
 0x1cc   : > { %v1150_v8 = vadd.f32 %v1149_v15, %v3881_v54  ;;  %1645 = vrot.lane.b32.xlu0 %v3939_v23, %s3386_s9  ;;  %1427 = vrot.lane.b32.xlu1 %v3939_v23, %s3389_s12 }
 0x1cd   : > { %v1151_v35 = vpop.f32.mrf.mxu0 }
 0x1ce   : > { %v1237_v25 = vmul.f32 0.2, %v1150_v8  ;;  %vm1229_vm8 = vcmp.ge.f32.partialorder %v1150_v8, 0.0  ;;  %v1152_v37 = vadd.f32 %v1151_v35, %v3881_v54 }
 0x1d0   : > { %1577 = vrot.lane.b32.xlu0 %v3939_v23, %s3387_s10  ;;  %1367 = vrot.lane.b32.xlu1 %v3939_v23, %s3390_s13  ;;  %v3958_v28 = vsel %vm1229_vm8, %v1150_v8, %v1237_v25  ;;  %v1238_v39 = vmul.f32 0.2, %v1152_v37  ;;  %vm1230_vm11 = vcmp.ge.f32.partialorder %v1152_v37, 0.0 }
 0x1d2   : > { %v3990_v45 = vsel %vm1230_vm11, %v1152_v37, %v1238_v39  ;;  %vm4104_vm11 = vcmp.ne.s32.totalorder %v288_v17, 0 }
 0x1d3   : > { %v1220_v29 = vpop.f32.mrf.mxu1 }
 0x1d4   : > { %v1221_v42 = vadd.f32 %v1220_v29, %v3881_v54  ;;  %1299 = vrot.lane.b32.xlu1 %v3939_v23, %s3392_s14  ;;  %1775 = vrot.lane.b32.xlu0 %v3958_v28, %s3384_s30 }
 0x1d5   : > { %v1222_v41 = vpop.f32.mrf.mxu1 }
 0x1d6   : > { %v1239_v33 = vmul.f32 0.2, %v1221_v42  ;;  %vm1231_vm9 = vcmp.ge.f32.partialorder %v1221_v42, 0.0  ;;  %v1223_v46 = vadd.f32 %v1222_v41, %v3881_v54  ;;  %v4025_v54 = vpop.permute.xlu0 %1359 }
 0x1d8   : > { %1715 = vrot.lane.b32.xlu1 %v3958_v28, %s3385_s8  ;;  %1497 = vrot.lane.b32.xlu0 %v3958_v28, %s3388_s11  ;;  %v3969_v34 = vsel %vm1231_vm9, %v1221_v42, %v1239_v33  ;;  %v1240_v49 = vmul.f32 0.2, %v1223_v46  ;;  %vm1232_vm8 = vcmp.ge.f32.partialorder %v1223_v46, 0.0  ;;  %vm4096_vm9 = vcmp.ne.s32.totalorder %v289_v14, 0 }
 0x1da   : > { %v4017_v51 = vsel %vm1232_vm8, %v1223_v46, %v1240_v49  ;;  %vm4887_vm8 = vcmask 7168  }
 0x1dc   : > { %1429 = vrot.lane.b32.xlu0 %v3958_v28, %s3389_s12  ;;  %1779 = vrot.lane.b32.xlu1 %v3969_v34, %s3384_s30 }
 0x1e0   : > { %1369 = vrot.lane.b32.xlu0 %v3958_v28, %s3390_s13  ;;  %1647 = vrot.lane.b32.xlu1 %v3958_v28, %s3386_s9 }
 0x1e4   : > { %1301 = vrot.lane.b32.xlu0 %v3958_v28, %s3392_s14  ;;  %1719 = vrot.lane.b32.xlu1 %v3969_v34, %s3385_s8 }
 0x1e8   : > { %1501 = vrot.lane.b32.xlu0 %v3969_v34, %s3388_s11  ;;  %1579 = vrot.lane.b32.xlu1 %v3958_v28, %s3387_s10 }
 0x1ec   : > { %1777 = vrot.lane.b32.xlu0 %v3990_v45, %s3384_s30  ;;  %1651 = vrot.lane.b32.xlu1 %v3969_v34, %s3386_s9 }
 0x1f0   : > { %1717 = vrot.lane.b32.xlu0 %v3990_v45, %s3385_s8  ;;  %1583 = vrot.lane.b32.xlu1 %v3969_v34, %s3387_s10 }
 0x1f4   : > { %1649 = vrot.lane.b32.xlu0 %v3990_v45, %s3386_s9  ;;  %1499 = vrot.lane.b32.xlu1 %v3990_v45, %s3388_s11 }
 0x1f8   : > { %1581 = vrot.lane.b32.xlu0 %v3990_v45, %s3387_s10  ;;  %1431 = vrot.lane.b32.xlu1 %v3990_v45, %s3389_s12 }
 0x1fc   : > { %1781 = vrot.lane.b32.xlu0 %v4017_v51, %s3384_s30  ;;  %1371 = vrot.lane.b32.xlu1 %v3990_v45, %s3390_s13 }
 0x200   : > { %1721 = vrot.lane.b32.xlu0 %v4017_v51, %s3385_s8  ;;  %1303 = vrot.lane.b32.xlu1 %v3990_v45, %s3392_s14 }
 0x204   : > { %1653 = vrot.lane.b32.xlu0 %v4017_v51, %s3386_s9  ;;  %1503 = vrot.lane.b32.xlu1 %v4017_v51, %s3388_s11 }
 0x205   : > { %v1768_v59 = vpop.permute.xlu0 %1767 }
 0x208   : > { %1585 = vrot.lane.b32.xlu0 %v4017_v51, %s3387_s10  ;;  %1435 = vrot.lane.b32.xlu1 %v4017_v51, %s3389_s12 }
 0x20a   : > { %v4041_v58 = vpop.permute.xlu0 %1711  ;;  %v4043_v63 = vpop.permute.xlu1 %1771 }
 0x20c   : > { %1433 = vrot.lane.b32.xlu0 %v3969_v34, %s3389_s12  ;;  %1375 = vrot.lane.b32.xlu1 %v4017_v51, %s3390_s13 }
 0x20e   : > { %v1640_v7 = vpop.permute.xlu0 %1639  ;;  %v1708_v5 = vpop.permute.xlu1 %1707 }
 0x210   : > { %1373 = vrot.lane.b32.xlu0 %v3969_v34, %s3390_s13  ;;  %1307 = vrot.lane.b32.xlu1 %v4017_v51, %s3392_s14 }
 0x212   : > { %v4053_v4 = vpop.permute.xlu0 %1575  ;;  %v4055_v10 = vpop.permute.xlu1 %1643 }
 0x214   : > { %1305 = vrot.lane.b32.xlu0 %v3969_v34, %s3392_s14  ;;  %2429 = vrot.lane.b32.xlu1 %v3391_v6, %s3388_s11 }
 0x216   : > { %v1490_v20 = vpop.permute.xlu0 %1489  ;;  %v1572_v32 = vpop.permute.xlu1 %1571 }
 0x218   : > { %1893 = vperm.xlu0 %3374, %v1890_v11   ;;  %2301 = vrot.lane.b32.xlu1 %v3391_v6, %s3390_s13 }
 0x21a   : > { %v1362_v9 = vpop.permute.xlu0 %1361  ;;  %v1422_v15 = vpop.permute.xlu1 %1421 }
 0x21c   : > { %2361 = vrot.lane.b32.xlu0 %v3391_v6, %s3389_s12 }
 0x21e   : > { %v4068_v8 = vpop.permute.xlu0 %1493  ;;  %v1294_v25 = vpop.permute.xlu1 %1293 }
 0x220   : > { %2233 = vrot.lane.b32.xlu0 %v3391_v6, %s3392_s14 }
 0x222   : > { %v4072_v29 = vpop.permute.xlu0 %1425  ;;  %v1770_v42 = vpop.permute.xlu1 %1769 }
 0x223   : > { %v1785_v33 = vsel %vm4852_vm1, %v1768_v59, %v1770_v42  ;;  %v1786_v35 = vsel %vm4852_vm1, %v1770_v42, %v4043_v63 }
 0x224   : > { %3259 = vmatprep.subr.msk.mxu0 %vm3599_vm0, %v1786_v35  ;;  %2725 = vrot.lane.b32.xlu0 %v3391_v6, %s3384_s30 }
 0x225   : > { %3260 = vmatpush1.msk.msra.mxu0 %vm3608_vm2, %v1785_v33 }
 0x226   : > { %v4083_v37 = vpop.permute.xlu0 %1365  ;;  %v1710_v39 = vpop.permute.xlu1 %1709 }
 0x227   : > { %v1726_v41 = vsel %vm4850_vm3, %v1710_v39, %v4041_v58  ;;  %v1725_v46 = vsel %vm4850_vm3, %v1708_v5, %v1710_v39 }
 0x228   : > { %1915 = vmatprep.subr.mxu0 %v1726_v41  ;;  %2665 = vrot.lane.b32.xlu0 %v3391_v6, %s3385_s8 }
 0x229   : > { %1916 = vmatpush1.msra.mxu0 %v1725_v46 }
 0x22a   : > { %v4090_v49 = vpop.permute.xlu0 %1297  ;;  %v1574_v59 = vpop.permute.xlu1 %1573 }
 0x22b   : > { %v1590_v12 = vsel %vm4849_vm7, %v1574_v59, %v4053_v4  ;;  %v1589_v13 = vsel %vm4849_vm7, %v1572_v32, %v1574_v59  ;;  %vm4889_vm7 = vcmask 252928  }
 0x22c   : > { %2597 = vrot.lane.b32.xlu0 %v3391_v6, %s3386_s9  ;;  %vm4890_vm3 = vmmov %vm4889_vm7 }
 0x22e   : > { %v1642_v42 = vpop.permute.xlu0 %1641  ;;  %v4100_v33 = vpop.permute.xlu1 %1491 }
 0x22f   : > { %v1657_v35 = vsel %vm4848_vm6, %v1640_v7, %v1642_v42  ;;  %v1658_v39 = vsel %vm4848_vm6, %v1642_v42, %v4055_v10  ;;  %v1506_v7 = vsel %vm4887_vm8, %v1490_v20, %v4100_v33  ;;  %vm4888_vm6 = vmmov %vm4887_vm8  ;;  %v1377_v42 = vsel %vm4851_vm10, %v4025_v54, %v1362_v9 }
 0x230   : > { %3261 = vmatprep.subr.msk.mxu0 %vm4096_vm9, %v1658_v39  ;;  %2529 = vrot.lane.b32.xlu0 %v3391_v6, %s3387_s10  ;;  %v1505_v32 = vsel %vm4888_vm6, %v4015_v53, %v1490_v20  ;;  %vm4891_vm6 = vcmask 269312   ;;  %vm4894_vm8 = vcmask 785408  }
 0x231   : > { %3262 = vmatpush1.msk.msra.mxu0 %vm4104_vm11, %v1657_v35 }
 0x232   : > { %v4120_v14 = vpop.permute.xlu0 %1423  ;;  %3263 = vmatprep.subr.msk.mxu0 %vm3599_vm0, %v1590_v12  ;;  %v4124_v17 = vpop.permute.xlu1 %1363 }
 0x233   : > { %3264 = vmatpush1.msk.msra.mxu0 %vm3608_vm2, %v1589_v13  ;;  %v1378_v53 = vsel %vm4851_vm10, %v1362_v9, %v4124_v17  ;;  %vm4902_vm10 = vcmask 1039360  }
 0x234   : > { %1921 = vmatprep.subr.mxu0 %v3916_v2  ;;  %v1438_v2 = vsel %vm4889_vm7, %v1422_v15, %v4120_v14  ;;  %vm4893_vm7 = vcmask 588800  }
 0x235   : > { %1922 = vmatpush1.msra.mxu0 %v3884_v62  ;;  %v1437_v62 = vsel %vm4890_vm3, %v3984_v38, %v1422_v15  ;;  %v4159_v15 = vld [vmem:[%s4838_s2] sm:$0xff]  ;;  %vm4892_vm3 = vmmov %vm4891_vm6 }
 0x236   : > { %v4134_v41 = vpop.permute.xlu0 %1295  ;;  %3265 = vmatprep.subr.msk.mxu0 %vm4096_vm9, %v1506_v7  ;;  %v1774_v46 = vpop.permute.xlu1 %1773  ;;  %v1309_v35 = vsel %vm4892_vm3, %v3996_v40, %v1294_v25  ;;  %vm4194_vm3 = vcmp.ne.s32.totalorder %v291_v26, 0 }
 0x237   : > { %3266 = vmatpush1.msk.msra.mxu0 %vm4104_vm11, %v1505_v32  ;;  %v1310_v38 = vsel %vm4891_vm6, %v1294_v25, %v4134_v41  ;;  %v1787_v25 = vsel %vm4852_vm1, %v4043_v63, %v1774_v46  ;;  %vm4895_vm6 = vmmov %vm4894_vm8 }
 0x238   : > { %3267 = vmatprep.subr.msk.mxu0 %vm3599_vm0, %v1438_v2 }
 0x239   : > { %3268 = vmatpush1.msk.msra.mxu0 %vm3608_vm2, %v1437_v62 }
 0x23a   : > { %v1714_v20 = vpop.permute.xlu0 %1713  ;;  %1927 = vmatprep.subr.mxu0 %v1378_v53  ;;  %v4150_v59 = vpop.permute.xlu1 %1495 }
 0x23b   : > { %1928 = vmatpush1.msra.mxu0 %v1377_v42  ;;  %v1727_v53 = vsel %vm4895_vm6, %v4041_v58, %v1714_v20 }
 0x23c   : > { %3269 = vmatprep.subr.msk.mxu0 %vm4096_vm9, %v1310_v38 }
 0x23d   : > { %3270 = vmatpush1.msk.msra.mxu0 %vm4104_vm11, %v1309_v35 }
 0x23e   : > { %v1646_v39 = vpop.permute.xlu0 %1645  ;;  %3224 = vmatmul.mubr.msk.f32.vlgmr.msra.gmra.mxu0 %vm4893_vm7, %v4159_v15  ;;  %v4169_v54 = vpop.permute.xlu1 %1427  ;;  %vm4202_vm7 = vcmp.ne.s32.totalorder %v290_v30, 0 }
 0x23f   : > { %2105 = vmatprep.mubr.f32.mxu0 %v3391_v6 }
 0x242   : > { %v1578_v9 = vpop.permute.xlu0 %1577  ;;  %v4172_v12 = vpop.permute.xlu1 %1367 }
 0x246   : > { %v1776_v13 = vpop.permute.xlu0 %1775  ;;  %v4174_v7 = vpop.permute.xlu1 %1299 }
 0x247   : > { %v1788_v40 = vsel %vm4852_vm1, %v1774_v46, %v1776_v13 }
 0x248   : > { %3271 = vmatprep.subr.msk.mxu1 %vm3634_vm4, %v1788_v40  ;;  %v4898_v40 = vmov 0 }
 0x249   : > { %3272 = vmatpush1.msk.msra.mxu1 %vm3645_vm5, %v1787_v25  ;;  %v4899_v40 = vsel %vm4202_vm7, 4294967295, %v4898_v40 }
 0x24a   : > { %v4183_v32 = vpop.permute.xlu0 %1497  ;;  %v1716_v2 = vpop.permute.xlu1 %1715 }
 0x24b   : > { %v1728_v62 = vsel %vm4894_vm8, %v1714_v20, %v1716_v2  ;;  %vm4900_vm8 = vcmask 793600  }
 0x24c   : > { %1986 = vmatprep.subr.mxu1 %v1728_v62  ;;  %vm4901_vm6 = vmmov %vm4900_vm8 }
 0x24d   : > { %1987 = vmatpush1.msra.mxu1 %v1727_v53  ;;  %v1659_v20 = vsel %vm4901_vm6, %v4055_v10, %v1646_v39 }
 0x24e   : > { %v4188_v42 = vpop.permute.xlu0 %1429  ;;  %v4190_v38 = vpop.permute.xlu1 %1779 }
 0x252   : > { %v4198_v46 = vpop.permute.xlu0 %1369  ;;  %v1648_v35 = vpop.permute.xlu1 %1647 }
 0x253   : > { %v1660_v58 = vsel %vm4900_vm8, %v1646_v39, %v1648_v35  ;;  %vm4903_vm8 = vmmov %vm4902_vm10 }
 0x254   : > { %3273 = vmatprep.subr.msk.mxu1 %vm4194_vm3, %v1660_v58  ;;  %v1591_v62 = vsel %vm4903_vm8, %v4053_v4, %v1578_v9  ;;  %vm4906_vm8 = vcmask 252928  }
 0x255   : > { %3274 = vmatpush1.msk.msra.mxu1 %vm4202_vm7, %v1659_v20 }
 0x256   : > { %v4213_v19 = vpop.permute.xlu0 %1301  ;;  %v4215_v26 = vpop.permute.xlu1 %1719 }
 0x25a   : > { %v4217_v24 = vpop.permute.xlu0 %1501  ;;  %v1580_v30 = vpop.permute.xlu1 %1579 }
 0x25b   : > { %v1592_v25 = vsel %vm4902_vm10, %v1578_v9, %v1580_v30  ;;  %vm4904_vm10 = vcmask 7168  }
 0x25c   : > { %3275 = vmatprep.subr.msk.mxu1 %vm3634_vm4, %v1592_v25  ;;  %v1508_v4 = vsel %vm4904_vm10, %v4068_v8, %v4150_v59  ;;  %vm4905_vm6 = vmmov %vm4904_vm10 }
 0x25d   : > { %3276 = vmatpush1.msk.msra.mxu1 %vm3645_vm5, %v1591_v62  ;;  %v1507_v9 = vsel %vm4905_vm6, %v4100_v33, %v4068_v8  ;;  %vm4907_vm10 = vmmov %vm4906_vm8  ;;  %vm4908_vm6 = vcmask 785408  }
 0x25e   : > { %v1778_v10 = vpop.permute.xlu0 %1777  ;;  %1992 = vmatprep.subr.mxu1 %v3939_v23  ;;  %v4227_v39 = vpop.permute.xlu1 %1651  ;;  %v1439_v23 = vsel %vm4907_vm10, %v4120_v14, %v4072_v29 }
 0x25f   : > { %v1789_v53 = vsel %vm4852_vm1, %v1776_v13, %v1778_v10  ;;  %v1790_v58 = vsel %vm4852_vm1, %v1778_v10, %v4190_v38  ;;  %1993 = vmatpush1.msra.mxu1 %v3889_v47  ;;  %v1440_v47 = vsel %vm4906_vm8, %v4072_v29, %v4169_v54  ;;  %vm4909_vm1 = vcmask 261120   ;;  %vm4910_vm8 = vmmov %vm4908_vm6 }
 0x260   : > { %3277 = vmatprep.subr.msk.mxu1 %vm4194_vm3, %v1508_v4  ;;  %3283 = vmatprep.subr.msk.mxu0 %vm3774_vm13, %v1790_v58  ;;  %v1380_v20 = vsel %vm4909_vm1, %v4083_v37, %v4172_v12  ;;  %vm4911_vm10 = vmmov %vm4909_vm1 }
 0x261   : > { %3278 = vmatpush1.msk.msra.mxu1 %vm4202_vm7, %v1507_v9  ;;  %3284 = vmatpush1.msk.msra.mxu0 %vm3785_vm14, %v1789_v53  ;;  %v1379_v29 = vsel %vm4911_vm10, %v4124_v17, %v4083_v37  ;;  %v4916_v17 = vmov 0  ;;  %vm4918_vm10 = vcmask 793600  }
 0x262   : > { %v1718_v8 = vpop.permute.xlu0 %1717  ;;  %3279 = vmatprep.subr.msk.mxu1 %vm3634_vm4, %v1440_v47  ;;  %v4255_v33 = vpop.permute.xlu1 %1583 }
 0x263   : > { %v1729_v13 = vsel %vm4908_vm6, %v1716_v2, %v1718_v8  ;;  %3280 = vmatpush1.msk.msra.mxu1 %vm3645_vm5, %v1439_v23  ;;  %v1730_v25 = vsel %vm4910_vm8, %v1718_v8, %v4215_v26  ;;  %vm4912_vm6 = vcmask 269312   ;;  %vm4273_vm5 = vcmp.ne.s32.totalorder %v293_v52, 0 }
 0x264   : > { %1998 = vmatprep.subr.mxu1 %v1380_v20  ;;  %2057 = vmatprep.subr.mxu0 %v1730_v25  ;;  %v1312_v14 = vsel %vm4912_vm6, %v4090_v49, %v4174_v7  ;;  %v4913_v2 = vmov 0  ;;  %vm4915_vm1 = vmmov %vm4912_vm6  ;;  %vm4286_vm8 = vcmp.ne.s32.totalorder %v292_v56, 0 }
 0x265   : > { %1999 = vmatpush1.msra.mxu1 %v1379_v29  ;;  %2058 = vmatpush1.msra.mxu0 %v1729_v13  ;;  %v4914_v2 = vsel %vm4273_vm5, 4294967295, %v4913_v2  ;;  %v1311_v62 = vsel %vm4915_vm1, %v4134_v41, %v4090_v49  ;;  %v4917_v17 = vsel %vm4286_vm8, 4294967295, %v4916_v17  ;;  %vm4919_vm6 = vmmov %vm4918_vm10  ;;  %vm4920_vm1 = vcmask 588800  }
 0x266   : > { %v1650_v10 = vpop.permute.xlu0 %1649  ;;  %3281 = vmatprep.subr.msk.mxu1 %vm4194_vm3, %v1312_v14  ;;  %v4282_v37 = vpop.permute.xlu1 %1499 }
 0x267   : > { %v1661_v44 = vsel %vm4918_vm10, %v1648_v35, %v1650_v10  ;;  %v1662_v52 = vsel %vm4919_vm6, %v1650_v10, %v4227_v39  ;;  %3282 = vmatpush1.msk.msra.mxu1 %vm4202_vm7, %v1311_v62  ;;  %vm4921_vm10 = vcmask 1039360   ;;  %vm4924_vm7 = vcmask 777216  }
 0x268   : > { %3225 = vmatmul.mubr.msk.f32.vlgmr.msra.gmra.mxu1 %vm4920_vm1, %v4159_v15  ;;  %3285 = vmatprep.subr.msk.mxu0 %vm4273_vm5, %v1662_v52  ;;  %vm4922_vm6 = vmmov %vm4921_vm10  ;;  %vm4923_vm1 = vcmask 7168  }
 0x269   : > { %3286 = vmatpush1.msk.msra.mxu0 %vm4286_vm8, %v1661_v44  ;;  %2176 = vmatprep.mubr.f32.mxu1 %v3391_v6  ;;  %v1510_v58 = vsel %vm4923_vm1, %v4183_v32, %v4282_v37 }
 0x26a   : > { %v1582_v48 = vpop.permute.xlu0 %1581  ;;  %v1432_v56 = vpop.permute.xlu1 %1431 }
 0x26b   : > { %v1593_v49 = vsel %vm4921_vm10, %v1580_v30, %v1582_v48  ;;  %v1594_v41 = vsel %vm4922_vm6, %v1582_v48, %v4255_v33  ;;  %vm4925_vm10 = vmmov %vm4924_vm7 }
 0x26c   : > { %3287 = vmatprep.subr.msk.mxu0 %vm3774_vm13, %v1594_v41  ;;  %vm4926_vm6 = vmmov %vm4923_vm1  ;;  %vm4927_vm1 = vcmask 252928  }
 0x26d   : > { %3288 = vmatpush1.msk.msra.mxu0 %vm3785_vm14, %v1593_v49  ;;  %v1509_v9 = vsel %vm4926_vm6, %v4150_v59, %v4183_v32  ;;  %vm4930_vm6 = vcmask 261120  }
 0x26e   : > { %v1782_v35 = vpop.permute.xlu0 %1781  ;;  %2063 = vmatprep.subr.mxu0 %v3990_v45  ;;  %v1372_v53 = vpop.permute.xlu1 %1371  ;;  %v1442_v45 = vsel %vm4927_vm1, %v4188_v42, %v1432_v56 }
 0x26f   : > { %v1791_v30 = vsel %vm4924_vm7, %v4190_v38, %v1782_v35  ;;  %v1792_v4 = vsel %vm4925_vm10, %v1782_v35, %v4002_v43  ;;  %2064 = vmatpush1.msra.mxu0 %v3958_v28  ;;  %vm4928_vm7 = vmmov %vm4927_vm1  ;;  %vm4929_vm10 = vcmask 785408   ;;  %v1382_v38 = vsel %vm4930_vm6, %v4198_v46, %v1372_v53 }
 0x270   : > { %3289 = vmatprep.subr.msk.mxu0 %vm4273_vm5, %v1510_v58  ;;  %3295 = vmatprep.subr.msk.mxu1 %vm3807_vm15, %v1792_v4  ;;  %v1441_v28 = vsel %vm4928_vm7, %v4169_v54, %v4188_v42  ;;  %vm4931_vm1 = vmmov %vm4929_vm10 }
 0x271   : > { %3290 = vmatpush1.msk.msra.mxu0 %vm4286_vm8, %v1509_v9  ;;  %3296 = vmatpush1.msk.msra.mxu1 %vm3813_vm12, %v1791_v30  ;;  %vm4932_vm7 = vmmov %vm4930_vm6 }
 0x272   : > { %v1722_v43 = vpop.permute.xlu0 %1721  ;;  %3291 = vmatprep.subr.msk.mxu0 %vm3774_vm13, %v1442_v45  ;;  %v1304_v59 = vpop.permute.xlu1 %1303  ;;  %v1381_v54 = vsel %vm4932_vm7, %v4172_v12, %v4198_v46  ;;  %vm4933_vm13 = vcmask 269312   ;;  %v4937_v46 = vmov 0 }
 0x273   : > { %v1731_v32 = vsel %vm4929_vm10, %v4215_v26, %v1722_v43  ;;  %3292 = vmatpush1.msk.msra.mxu0 %vm3785_vm14, %v1441_v28  ;;  %v1732_v47 = vsel %vm4931_vm1, %v1722_v43, %v4013_v50  ;;  %v1314_v42 = vsel %vm4933_vm13, %v4213_v19, %v1304_v59  ;;  %vm4351_vm10 = vcmp.ne.s32.totalorder %v295_v3, 0  ;;  %vm4936_vm6 = vmmov %vm4933_vm13 }
 0x274   : > { %2069 = vmatprep.subr.mxu0 %v1382_v38  ;;  %2128 = vmatprep.subr.mxu1 %v1732_v47  ;;  %v1313_v50 = vsel %vm4936_vm6, %v4174_v7, %v4213_v19  ;;  %vm4362_vm13 = vcmp.ne.s32.totalorder %v294_v16, 0  ;;  %vm4939_vm1 = vcmask 793600   ;;  %vm4941_vm6 = vcmask 588800  }
 0x275   : > { %2070 = vmatpush1.msra.mxu0 %v1381_v54  ;;  %2129 = vmatpush1.msra.mxu1 %v1731_v32  ;;  %v4938_v46 = vsel %vm4362_vm13, 4294967295, %v4937_v46  ;;  %vm4940_vm7 = vmmov %vm4939_vm1 }
 0x276   : > { %v1654_v23 = vpop.permute.xlu0 %1653  ;;  %3293 = vmatprep.subr.msk.mxu0 %vm4273_vm5, %v1314_v42  ;;  %v1504_v12 = vpop.permute.xlu1 %1503 }
 0x277   : > { %v1663_v61 = vsel %vm4939_vm1, %v4227_v39, %v1654_v23  ;;  %v1664_v3 = vsel %vm4940_vm7, %v1654_v23, %v4023_v55  ;;  %3294 = vmatpush1.msk.msra.mxu0 %vm4286_vm8, %v1313_v50  ;;  %vm4942_vm1 = vcmask 1039360  }
 0x278   : > { %3226 = vmatmul.mubr.msk.f32.vlgmr.msra.gmra.mxu0 %vm4941_vm6, %v4159_v15  ;;  %3297 = vmatprep.subr.msk.mxu1 %vm4351_vm10, %v1664_v3  ;;  %vm4943_vm7 = vmmov %vm4942_vm1  ;;  %vm4944_vm6 = vcmask 7168  }
 0x279   : > { %3298 = vmatpush1.msk.msra.mxu1 %vm4362_vm13, %v1663_v61  ;;  %2905 = vmatprep.mubr.f32.mxu0 %v3391_v6  ;;  %v1512_v39 = vsel %vm4944_vm6, %v4217_v24, %v1504_v12 }
 0x27a   : > { %v1586_v1 = vpop.permute.xlu0 %1585  ;;  %v1436_v16 = vpop.permute.xlu1 %1435 }
 0x27b   : > { %v1595_v7 = vsel %vm4942_vm1, %v4255_v33, %v1586_v1  ;;  %v1596_v55 = vsel %vm4943_vm7, %v1586_v1, %v4035_v57  ;;  %vm4945_vm1 = vmmov %vm4944_vm6  ;;  %vm4946_vm7 = vcmask 252928   ;;  %vm4948_vm6 = vcmask 261120  }
 0x27c   : > { %3299 = vmatprep.subr.msk.mxu1 %vm3807_vm15, %v1596_v55  ;;  %v1511_v8 = vsel %vm4945_vm1, %v4282_v37, %v4217_v24  ;;  %vm4947_vm8 = vmmov %vm4946_vm7 }
 0x27d   : > { %3300 = vmatpush1.msk.msra.mxu1 %vm3813_vm12, %v1595_v7  ;;  %vm4949_vm1 = vmmov %vm4948_vm6 }
 0x27e   : > { %v1434_v19 = vpop.permute.xlu0 %1433  ;;  %2134 = vmatprep.subr.mxu1 %v4017_v51  ;;  %v1376_v33 = vpop.permute.xlu1 %1375 }
 0x27f   : > { %2135 = vmatpush1.msra.mxu1 %v3969_v34  ;;  %v1444_v57 = vsel %vm4946_vm7, %v1434_v19, %v1436_v16  ;;  %v1443_v51 = vsel %vm4947_vm8, %v1432_v56, %v1434_v19  ;;  %vm4950_vm7 = vcmask 269312   ;;  %vm4952_vm8 = vcmask 588800  }
 0x280   : > { %3301 = vmatprep.subr.msk.mxu1 %vm4351_vm10, %v1512_v39  ;;  %vm4951_vm5 = vmmov %vm4950_vm7 }
 0x281   : > { %3302 = vmatpush1.msk.msra.mxu1 %vm4362_vm13, %v1511_v8 }
 0x282   : > { %v1374_v13 = vpop.permute.xlu0 %1373  ;;  %3303 = vmatprep.subr.msk.mxu1 %vm3807_vm15, %v1444_v57  ;;  %v1308_v20 = vpop.permute.xlu1 %1307 }
 0x283   : > { %v1383_v34 = vsel %vm4948_vm6, %v1372_v53, %v1374_v13  ;;  %3304 = vmatpush1.msk.msra.mxu1 %vm3813_vm12, %v1443_v51  ;;  %v1384_v24 = vsel %vm4949_vm1, %v1374_v13, %v1376_v33 }
 0x284   : > { %2140 = vmatprep.subr.mxu1 %v1384_v24 }
 0x285   : > { %2141 = vmatpush1.msra.mxu1 %v1383_v34 }
 0x286   : > { %v1306_v25 = vpop.permute.xlu0 %1305  ;;  %v4544_v39 = vpop.permute.xlu1 %2429 }
 0x287   : > { %v1315_v29 = vsel %vm4950_vm7, %v1304_v59, %v1306_v25  ;;  %v1316_v14 = vsel %vm4951_vm5, %v1306_v25, %v1308_v20 }
 0x288   : > { %3305 = vmatprep.subr.msk.mxu1 %vm4351_vm10, %v1316_v14 }
 0x289   : > { %3306 = vmatpush1.msk.msra.mxu1 %vm4362_vm13, %v1315_v29 }
 0x28a   : > { %3227 = vmatmul.mubr.msk.f32.vlgmr.msra.gmra.mxu1 %vm4952_vm8, %v4159_v15  ;;  %v4553_v57 = vpop.permute.xlu1 %2301 }
 0x28b   : > { %2976 = vmatprep.mubr.f32.mxu1 %v3391_v6 }
 0x293   : > { %v4415_v62 = vpop.permute.xlu0 %1893 }
 0x297   : > { %v4501_v42 = vpop.permute.xlu0 %2361 }
 0x29b   : > { %v4513_v12 = vpop.permute.xlu0 %2233 }
 0x29f   : > { %v4520_v1 = vpop.permute.xlu0 %2725 }
 0x2a3   : > { %v4532_v7 = vpop.permute.xlu0 %2665 }
 0x2a7   : > { %v4538_v55 = vpop.permute.xlu0 %2597 }
 0x2ab   : > { %v4551_v33 = vpop.permute.xlu0 %2529 }
 0x2fe   : > { %v1965_v10 = vpop.f32.mrf.mxu0 }
 0x2ff   : > { %v1966_v37 = vadd.f32 %v1965_v10, %v4415_v62 }
 0x300   : > { %v1967_v48 = vpop.f32.mrf.mxu0 }
 0x301   : > { %vm2183_vm6 = vcmp.ge.f32.partialorder %v1966_v37, 0.0  ;;  %v2191_v44 = vmul.f32 0.2, %v1966_v37  ;;  %v1968_v15 = vadd.f32 %v1967_v48, %v4415_v62 }
 0x303   : > { %v4418_v52 = vsel %vm2183_vm6, %v1966_v37, %v2191_v44  ;;  %v2192_v56 = vmul.f32 0.2, %v1968_v15  ;;  %vm2184_vm5 = vcmp.ge.f32.partialorder %v1968_v15, 0.0 }
 0x304   : > { %2649 = vrot.lane.b32.xlu0 %v4418_v52, %s3385_s8  ;;  %2709 = vrot.lane.b32.xlu1 %v4418_v52, %s3384_s30 }
 0x305   : > { %v4437_v49 = vsel %vm2184_vm5, %v1968_v15, %v2192_v56  ;;  %v2832_v56 = vld [vmem:[%s4842_s6] sm:$0xff] }
 0x308   : > { %2513 = vrot.lane.b32.xlu0 %v4418_v52, %s3387_s10  ;;  %2581 = vrot.lane.b32.xlu1 %v4418_v52, %s3386_s9 }
 0x30c   : > { %2363 = vrot.lane.b32.xlu0 %v4418_v52, %s3389_s12  ;;  %2431 = vrot.lane.b32.xlu1 %v4418_v52, %s3388_s11 }
 0x310   : > { %2235 = vrot.lane.b32.xlu0 %v4418_v52, %s3392_s14  ;;  %2303 = vrot.lane.b32.xlu1 %v4418_v52, %s3390_s13 }
 0x314   : > { %2651 = vrot.lane.b32.xlu0 %v4437_v49, %s3385_s8  ;;  %2711 = vrot.lane.b32.xlu1 %v4437_v49, %s3384_s30 }
 0x318   : > { %2515 = vrot.lane.b32.xlu0 %v4437_v49, %s3387_s10  ;;  %2583 = vrot.lane.b32.xlu1 %v4437_v49, %s3386_s9 }
 0x31c   : > { %2433 = vrot.lane.b32.xlu0 %v4437_v49, %s3388_s11  ;;  %2365 = vrot.lane.b32.xlu1 %v4437_v49, %s3389_s12 }
 0x320   : > { %2305 = vrot.lane.b32.xlu0 %v4437_v49, %s3390_s13  ;;  %2237 = vrot.lane.b32.xlu1 %v4437_v49, %s3392_s14 }
 0x328   : > { %v2036_v41 = vpop.f32.mrf.mxu1 }
 0x329   : > { %v2037_v35 = vadd.f32 %v2036_v41, %v4415_v62 }
 0x32a   : > { %v2038_v30 = vpop.f32.mrf.mxu1 }
 0x32b   : > { %vm2185_vm1 = vcmp.ge.f32.partialorder %v2037_v35, 0.0  ;;  %v2193_v53 = vmul.f32 0.2, %v2037_v35  ;;  %v2039_v4 = vadd.f32 %v2038_v30, %v4415_v62 }
 0x32d   : > { %v4456_v58 = vsel %vm2185_vm1, %v2037_v35, %v2193_v53  ;;  %v2194_v45 = vmul.f32 0.2, %v2039_v4  ;;  %vm2186_vm7 = vcmp.ge.f32.partialorder %v2039_v4, 0.0 }
 0x32e   : > { %2653 = vrot.lane.b32.xlu1 %v4456_v58, %s3385_s8  ;;  %2713 = vrot.lane.b32.xlu0 %v4456_v58, %s3384_s30 }
 0x32f   : > { %v4476_v59 = vsel %vm2186_vm7, %v2039_v4, %v2194_v45  ;;  %vm4953_vm7 = vcmask 777216  }
 0x332   : > { %2517 = vrot.lane.b32.xlu1 %v4456_v58, %s3387_s10  ;;  %2585 = vrot.lane.b32.xlu0 %v4456_v58, %s3386_s9 }
 0x336   : > { %2435 = vrot.lane.b32.xlu1 %v4456_v58, %s3388_s11  ;;  %2367 = vrot.lane.b32.xlu0 %v4456_v58, %s3389_s12 }
 0x338   : > { %v2107_v9 = vpop.f32.mrf.mxu0 }
 0x339   : > { %v2108_v28 = vadd.f32 %v2107_v9, %v4415_v62 }
 0x33a   : > { %2307 = vrot.lane.b32.xlu1 %v4456_v58, %s3390_s13  ;;  %2239 = vrot.lane.b32.xlu0 %v4456_v58, %s3392_s14  ;;  %v2109_v38 = vpop.f32.mrf.mxu0 }
 0x33b   : > { %vm2187_vm8 = vcmp.ge.f32.partialorder %v2108_v28, 0.0  ;;  %v2195_v43 = vmul.f32 0.2, %v2108_v28  ;;  %v2110_v47 = vadd.f32 %v2109_v38, %v4415_v62 }
 0x33d   : > { %v4478_v32 = vsel %vm2187_vm8, %v2108_v28, %v2195_v43  ;;  %v2196_v54 = vmul.f32 0.2, %v2110_v47  ;;  %vm2188_vm6 = vcmp.ge.f32.partialorder %v2110_v47, 0.0  ;;  %vm4954_vm8 = vmmov %vm4953_vm7 }
 0x33e   : > { %2715 = vrot.lane.b32.xlu1 %v4476_v59, %s3384_s30  ;;  %2717 = vrot.lane.b32.xlu0 %v4478_v32, %s3384_s30 }
 0x33f   : > { %v4507_v50 = vsel %vm2188_vm6, %v2110_v47, %v2196_v54  ;;  %vm4955_vm6 = vcmask 785408  }
 0x342   : > { %2657 = vrot.lane.b32.xlu1 %v4478_v32, %s3385_s8  ;;  %2655 = vrot.lane.b32.xlu0 %v4476_v59, %s3385_s8 }
 0x346   : > { %2587 = vrot.lane.b32.xlu1 %v4476_v59, %s3386_s9  ;;  %2589 = vrot.lane.b32.xlu0 %v4478_v32, %s3386_s9 }
 0x34a   : > { %2521 = vrot.lane.b32.xlu1 %v4478_v32, %s3387_s10  ;;  %2519 = vrot.lane.b32.xlu0 %v4476_v59, %s3387_s10  ;;  %v2178_v23 = vpop.f32.mrf.mxu1 }
 0x34b   : > { %v2179_v61 = vadd.f32 %v2178_v23, %v4415_v62 }
 0x34c   : > { %v2180_v19 = vpop.f32.mrf.mxu1 }
 0x34d   : > { %v2197_v3 = vmul.f32 0.2, %v2179_v61  ;;  %vm2189_vm5 = vcmp.ge.f32.partialorder %v2179_v61, 0.0  ;;  %v2181_v8 = vadd.f32 %v2180_v19, %v4415_v62 }
 0x34e   : > { %2369 = vrot.lane.b32.xlu1 %v4476_v59, %s3389_s12  ;;  %2437 = vrot.lane.b32.xlu0 %v4476_v59, %s3388_s11 }
 0x34f   : > { %v4526_v16 = vsel %vm2189_vm5, %v2179_v61, %v2197_v3  ;;  %v2198_v51 = vmul.f32 0.2, %v2181_v8  ;;  %vm2190_vm1 = vcmp.ge.f32.partialorder %v2181_v8, 0.0  ;;  %vm4956_vm5 = vmmov %vm4955_vm6 }
 0x351   : > { %v4559_v13 = vsel %vm2190_vm1, %v2181_v8, %v2198_v51  ;;  %vm4957_vm1 = vcmask 793600  }
 0x352   : > { %2241 = vrot.lane.b32.xlu1 %v4476_v59, %s3392_s14  ;;  %2309 = vrot.lane.b32.xlu0 %v4476_v59, %s3390_s13  ;;  %vm4958_vm13 = vmmov %vm4957_vm1 }
 0x356   : > { %2439 = vrot.lane.b32.xlu1 %v4478_v32, %s3388_s11  ;;  %2441 = vrot.lane.b32.xlu0 %v4507_v50, %s3388_s11 }
 0x35a   : > { %2371 = vrot.lane.b32.xlu1 %v4478_v32, %s3389_s12  ;;  %2373 = vrot.lane.b32.xlu0 %v4507_v50, %s3389_s12 }
 0x35e   : > { %2311 = vrot.lane.b32.xlu1 %v4478_v32, %s3390_s13  ;;  %2313 = vrot.lane.b32.xlu0 %v4507_v50, %s3390_s13 }
 0x362   : > { %2719 = vrot.lane.b32.xlu1 %v4507_v50, %s3384_s30  ;;  %2721 = vrot.lane.b32.xlu0 %v4526_v16, %s3384_s30 }
 0x366   : > { %2659 = vrot.lane.b32.xlu1 %v4507_v50, %s3385_s8  ;;  %2661 = vrot.lane.b32.xlu0 %v4526_v16, %s3385_s8 }
 0x36a   : > { %2591 = vrot.lane.b32.xlu1 %v4507_v50, %s3386_s9  ;;  %2593 = vrot.lane.b32.xlu0 %v4526_v16, %s3386_s9 }
 0x36e   : > { %2523 = vrot.lane.b32.xlu1 %v4507_v50, %s3387_s10  ;;  %2525 = vrot.lane.b32.xlu0 %v4526_v16, %s3387_s10 }
 0x372   : > { %2443 = vrot.lane.b32.xlu1 %v4526_v16, %s3388_s11  ;;  %2245 = vrot.lane.b32.xlu0 %v4507_v50, %s3392_s14 }
 0x376   : > { %v2650_v34 = vpop.permute.xlu0 %2649  ;;  %2375 = vrot.lane.b32.xlu1 %v4526_v16, %s3389_s12  ;;  %2445 = vrot.lane.b32.xlu0 %v4559_v13, %s3388_s11  ;;  %v2710_v24 = vpop.permute.xlu1 %2709 }
 0x37a   : > { %v2514_v20 = vpop.permute.xlu0 %2513  ;;  %2723 = vrot.lane.b32.xlu1 %v4559_v13, %s3384_s30  ;;  %2377 = vrot.lane.b32.xlu0 %v4559_v13, %s3389_s12  ;;  %v2582_v25 = vpop.permute.xlu1 %2581 }
 0x37e   : > { %v2364_v29 = vpop.permute.xlu0 %2363  ;;  %2663 = vrot.lane.b32.xlu1 %v4559_v13, %s3385_s8  ;;  %2317 = vrot.lane.b32.xlu0 %v4559_v13, %s3390_s13  ;;  %v2432_v14 = vpop.permute.xlu1 %2431 }
 0x382   : > { %2595 = vrot.lane.b32.xlu1 %v4559_v13, %s3386_s9  ;;  %2249 = vrot.lane.b32.xlu0 %v4559_v13, %s3392_s14  ;;  %v2236_v62 = vpop.permute.xlu0 %2235  ;;  %v2304_v10 = vpop.permute.xlu1 %2303  ;;  %s4823_s9 = scalar_lea.vmem %s4843_s7, %s3234_s29 }
 0x386   : > { %2527 = vrot.lane.b32.xlu1 %v4559_v13, %s3387_s10  ;;  %v2652_v37 = vpop.permute.xlu0 %2651  ;;  %v2712_v44 = vpop.permute.xlu1 %2711 }
 0x387   : > { %v2727_v28 = vsel %vm4954_vm8, %v2710_v24, %v2712_v44  ;;  %v2667_v38 = vsel %vm4956_vm5, %v2650_v34, %v2652_v37  ;;  %vm4963_vm5 = vcmask 252928  }
 0x38a   : > { %2315 = vrot.lane.b32.xlu1 %v4526_v16, %s3390_s13  ;;  %v2516_v48 = vpop.permute.xlu0 %2515  ;;  %v2584_v15 = vpop.permute.xlu1 %2583 }
 0x38b   : > { %v2599_v61 = vsel %vm4958_vm13, %v2582_v25, %v2584_v15  ;;  %vm4961_vm13 = vcmask 7168  }
 0x38e   : > { %2243 = vrot.lane.b32.xlu1 %v4478_v32, %s3392_s14  ;;  %v4588_v41 = vpop.permute.xlu0 %2433  ;;  %v4590_v35 = vpop.permute.xlu1 %2365 }
 0x38f   : > { %v2448_v34 = vsel %vm4961_vm13, %v2432_v14, %v4588_v41 }
 0x392   : > { %2247 = vrot.lane.b32.xlu1 %v4526_v16, %s3392_s14  ;;  %v4592_v53 = vpop.permute.xlu0 %2305  ;;  %v4594_v30 = vpop.permute.xlu1 %2237 }
 0x396   : > { %2835 = vperm.xlu1 %3375, %v2832_v56  }
 0x3a0   : > { %v2714_v4 = vpop.permute.xlu0 %2713  ;;  %v2654_v9 = vpop.permute.xlu1 %2653 }
 0x3a1   : > { %v2728_v45 = vsel %vm4953_vm7, %v2712_v44, %v2714_v4  ;;  %v2668_v43 = vsel %vm4955_vm6, %v2652_v37, %v2654_v9  ;;  %vm4959_vm7 = vcmask 1039360   ;;  %vm4962_vm6 = vmmov %vm4961_vm13  ;;  %v2380_v37 = vsel %vm4963_vm5, %v2364_v29, %v4590_v35 }
 0x3a2   : > { %3307 = vmatprep.subr.msk.mxu0 %vm3599_vm0, %v2728_v45  ;;  %vm4960_vm8 = vmmov %vm4959_vm7  ;;  %v2447_v24 = vsel %vm4962_vm6, %v4544_v39, %v2432_v14  ;;  %vm4967_vm13 = vcmask 269312   ;;  %vm4968_vm6 = vcmask 777216  }
 0x3a3   : > { %3308 = vmatpush1.msk.msra.mxu0 %vm3608_vm2, %v2727_v28  ;;  %v2531_v19 = vsel %vm4960_vm8, %v2514_v20, %v2516_v48 }
 0x3a4   : > { %v2586_v47 = vpop.permute.xlu0 %2585  ;;  %2857 = vmatprep.subr.mxu0 %v2668_v43  ;;  %v2518_v54 = vpop.permute.xlu1 %2517 }
 0x3a5   : > { %v2600_v23 = vsel %vm4957_vm1, %v2584_v15, %v2586_v47  ;;  %2858 = vmatpush1.msra.mxu0 %v2667_v38  ;;  %v2532_v3 = vsel %vm4959_vm7, %v2516_v48, %v2518_v54  ;;  %vm4964_vm1 = vmmov %vm4963_vm5  ;;  %vm4965_vm7 = vcmask 261120   ;;  %v2252_v48 = vsel %vm4967_vm13, %v2236_v62, %v4594_v30 }
 0x3a6   : > { %3309 = vmatprep.subr.msk.mxu0 %vm4096_vm9, %v2600_v23  ;;  %vm4966_vm8 = vmmov %vm4965_vm7  ;;  %vm4971_vm5 = vnez %v4872_v36 }
 0x3a7   : > { %3310 = vmatpush1.msk.msra.mxu0 %vm4104_vm11, %v2599_v61  ;;  %v2319_v39 = vsel %vm4966_vm8, %v4553_v57, %v2304_v10 }
 0x3a8   : > { %v2368_v8 = vpop.permute.xlu0 %2367  ;;  %3311 = vmatprep.subr.msk.mxu0 %vm3599_vm0, %v2532_v3  ;;  %v2436_v51 = vpop.permute.xlu1 %2435 }
 0x3a9   : > { %3312 = vmatpush1.msk.msra.mxu0 %vm3608_vm2, %v2531_v19 }
 0x3aa   : > { %2863 = vmatprep.subr.mxu0 %v4437_v49  ;;  %v2379_v49 = vsel %vm4964_vm1, %v4501_v42, %v2364_v29  ;;  %vm4972_vm1 = vcmask 588800  }
 0x3ab   : > { %2864 = vmatpush1.msra.mxu0 %v4418_v52  ;;  %v2320_v52 = vsel %vm4965_vm7, %v2304_v10, %v4592_v53  ;;  %vm4973_vm7 = vcmask 785408  }
 0x3ac   : > { %v4622_v25 = vpop.permute.xlu0 %2239  ;;  %3313 = vmatprep.subr.msk.mxu0 %vm4096_vm9, %v2448_v34  ;;  %v2308_v20 = vpop.permute.xlu1 %2307  ;;  %vm4974_vm8 = vmmov %vm4973_vm7 }
 0x3ad   : > { %3314 = vmatpush1.msk.msra.mxu0 %vm4104_vm11, %v2447_v24 }
 0x3ae   : > { %3315 = vmatprep.subr.msk.mxu0 %vm3599_vm0, %v2380_v37  ;;  %vm4969_vm0 = vmmov %vm4968_vm6 }
 0x3af   : > { %3316 = vmatpush1.msk.msra.mxu0 %vm3608_vm2, %v2379_v49  ;;  %vm4970_vm2 = vmmov %vm4967_vm13  ;;  %vm4977_vm13 = vnez %v4899_v40 }
 0x3b0   : > { %v4640_v14 = vpop.permute.xlu0 %2717  ;;  %2869 = vmatprep.subr.mxu0 %v2320_v52  ;;  %v2716_v44 = vpop.permute.xlu1 %2715  ;;  %v2251_v57 = vsel %vm4970_vm2, %v4513_v12, %v2236_v62  ;;  %vm4980_vm2 = vcmask 7168  }
 0x3b1   : > { %v2729_v42 = vsel %vm4968_vm6, %v2714_v4, %v2716_v44  ;;  %v2730_v18 = vsel %vm4969_vm0, %v2716_v44, %v4640_v14  ;;  %2870 = vmatpush1.msra.mxu0 %v2319_v39  ;;  %vm4978_vm6 = vcmask 1039360  }
 0x3b2   : > { %3317 = vmatprep.subr.msk.mxu0 %vm4096_vm9, %v2252_v48  ;;  %3319 = vmatprep.subr.msk.mxu1 %vm3634_vm4, %v2730_v18  ;;  %vm4975_vm9 = vcmask 793600   ;;  %vm4979_vm0 = vmmov %vm4978_vm6 }
 0x3b3   : > { %3318 = vmatpush1.msk.msra.mxu0 %vm4104_vm11, %v2251_v57  ;;  %3320 = vmatpush1.msk.msra.mxu1 %vm4971_vm5, %v2729_v42  ;;  %vm4976_vm11 = vmmov %vm4975_vm9 }
 0x3b4   : > { %v2656_v29 = vpop.permute.xlu0 %2655  ;;  %v2658_v10 = vpop.permute.xlu1 %2657  ;;  %3228 = vmatmul.mubr.msk.f32.vlgmr.msra.gmra.mxu0 %vm4972_vm1, %v4650_v22  ;;  %vm4981_vm1 = vmmov %vm4980_vm2 }
 0x3b5   : > { %v2669_v15 = vsel %vm4973_vm7, %v2654_v9, %v2656_v29  ;;  %v2670_v12 = vsel %vm4974_vm8, %v2656_v29, %v2658_v10  ;;  %3047 = vmatprep.mubr.f32.mxu0 %v3391_v6  ;;  %v2449_v23 = vsel %vm4981_vm1, %v4588_v41, %v2436_v51  ;;  %vm4982_vm7 = vcmask 252928  }
 0x3b6   : > { %2928 = vmatprep.subr.mxu1 %v2670_v12  ;;  %vm4983_vm8 = vmmov %vm4982_vm7 }
 0x3b7   : > { %2929 = vmatpush1.msra.mxu1 %v2669_v15  ;;  %v2381_v61 = vsel %vm4983_vm8, %v4590_v35, %v2368_v8 }
 0x3b8   : > { %v2590_v11 = vpop.permute.xlu0 %2589  ;;  %v2588_v62 = vpop.permute.xlu1 %2587 }
 0x3b9   : > { %v2601_v5 = vsel %vm4975_vm9, %v2586_v47, %v2588_v62  ;;  %v2602_v56 = vsel %vm4976_vm11, %v2588_v62, %v2590_v11  ;;  %vm4984_vm9 = vcmask 261120  }
 0x3ba   : > { %3321 = vmatprep.subr.msk.mxu1 %vm4194_vm3, %v2602_v56  ;;  %vm4985_vm11 = vmmov %vm4984_vm9 }
 0x3bb   : > { %3322 = vmatpush1.msk.msra.mxu1 %vm4977_vm13, %v2601_v5  ;;  %v2321_v41 = vsel %vm4985_vm11, %v4592_v53, %v2308_v20  ;;  %vm4997_vm11 = vnez %v4917_v17 }
 0x3bc   : > { %v2520_v4 = vpop.permute.xlu0 %2519  ;;  %v2522_v9 = vpop.permute.xlu1 %2521 }
 0x3bd   : > { %v2533_v45 = vsel %vm4978_vm6, %v2518_v54, %v2520_v4  ;;  %v2534_v28 = vsel %vm4979_vm0, %v2520_v4, %v2522_v9  ;;  %vm4986_vm6 = vcmask 269312  }
 0x3be   : > { %3323 = vmatprep.subr.msk.mxu1 %vm3634_vm4, %v2534_v28  ;;  %vm4987_vm0 = vmmov %vm4986_vm6 }
 0x3bf   : > { %3324 = vmatpush1.msk.msra.mxu1 %vm4971_vm5, %v2533_v45  ;;  %v2253_v31 = vsel %vm4987_vm0, %v4594_v30, %v4622_v25 }
 0x3c0   : > { %v2438_v43 = vpop.permute.xlu0 %2437  ;;  %2934 = vmatprep.subr.mxu1 %v4476_v59  ;;  %v2370_v38 = vpop.permute.xlu1 %2369 }
 0x3c1   : > { %v2450_v47 = vsel %vm4980_vm2, %v2436_v51, %v2438_v43  ;;  %2935 = vmatpush1.msra.mxu1 %v4456_v58  ;;  %v2382_v54 = vsel %vm4982_vm7, %v2368_v8, %v2370_v38  ;;  %vm4992_vm2 = vcmask 785408   ;;  %vm4994_vm7 = vcmask 793600  }
 0x3c2   : > { %3325 = vmatprep.subr.msk.mxu1 %vm4194_vm3, %v2450_v47  ;;  %vm4993_vm1 = vmmov %vm4992_vm2 }
 0x3c3   : > { %3326 = vmatpush1.msk.msra.mxu1 %vm4977_vm13, %v2449_v23  ;;  %vm4995_vm8 = vmmov %vm4994_vm7 }
 0x3c4   : > { %v2310_v59 = vpop.permute.xlu0 %2309  ;;  %3327 = vmatprep.subr.msk.mxu1 %vm3634_vm4, %v2382_v54  ;;  %v4693_v3 = vpop.permute.xlu1 %2241  ;;  %vm4988_vm4 = vcmask 588800  }
 0x3c5   : > { %3328 = vmatpush1.msk.msra.mxu1 %vm4971_vm5, %v2381_v61  ;;  %v2322_v58 = vsel %vm4984_vm9, %v2308_v20, %v2310_v59  ;;  %v2254_v19 = vsel %vm4986_vm6, %v4622_v25, %v4693_v3  ;;  %vm4989_vm5 = vcmask 777216   ;;  %vm4996_vm9 = vnez %v4914_v2 }
 0x3c6   : > { %2940 = vmatprep.subr.mxu1 %v2322_v58  ;;  %vm4998_vm6 = vcmask 1039360  }
 0x3c7   : > { %2941 = vmatpush1.msra.mxu1 %v2321_v41  ;;  %vm4999_vm0 = vmmov %vm4998_vm6 }
 0x3c8   : > { %v4706_v35 = vpop.permute.xlu0 %2441  ;;  %3329 = vmatprep.subr.msk.mxu1 %vm4194_vm3, %v2254_v19  ;;  %v2440_v36 = vpop.permute.xlu1 %2439  ;;  %vm4990_vm3 = vmmov %vm4989_vm5 }
 0x3c9   : > { %3330 = vmatpush1.msk.msra.mxu1 %vm4977_vm13, %v2253_v31  ;;  %vm4991_vm13 = vnez %v4874_v60 }
 0x3ca   : > { %3229 = vmatmul.mubr.msk.f32.vlgmr.msra.gmra.mxu1 %vm4988_vm4, %v4650_v22  ;;  %vm5000_vm4 = vcmask 7168  }
 0x3cb   : > { %3118 = vmatprep.mubr.f32.mxu1 %v3391_v6  ;;  %v2452_v29 = vsel %vm5000_vm4, %v2440_v36, %v4706_v35 }
 0x3cc   : > { %v4715_v53 = vpop.permute.xlu0 %2373  ;;  %v2372_v8 = vpop.permute.xlu1 %2371 }
 0x3d0   : > { %v4717_v51 = vpop.permute.xlu0 %2313  ;;  %v2312_v30 = vpop.permute.xlu1 %2311 }
 0x3d4   : > { %v2722_v34 = vpop.permute.xlu0 %2721  ;;  %v2720_v24 = vpop.permute.xlu1 %2719 }
 0x3d5   : > { %v2731_v63 = vsel %vm4989_vm5, %v4640_v14, %v2720_v24  ;;  %v2732_v25 = vsel %vm4990_vm3, %v2720_v24, %v2722_v34  ;;  %vm5001_vm5 = vmmov %vm5000_vm4  ;;  %vm5002_vm3 = vcmask 252928  }
 0x3d6   : > { %3331 = vmatprep.subr.msk.mxu0 %vm4991_vm13, %v2732_v25  ;;  %v2384_v15 = vsel %vm5002_vm3, %v2372_v8, %v4715_v53 }
 0x3d7   : > { %3332 = vmatpush1.msk.msra.mxu0 %vm3785_vm14, %v2731_v63 }
 0x3d8   : > { %v2662_v6 = vpop.permute.xlu0 %2661  ;;  %v2660_v40 = vpop.permute.xlu1 %2659 }
 0x3d9   : > { %v2671_v20 = vsel %vm4992_vm2, %v2658_v10, %v2660_v40  ;;  %v2672_v37 = vsel %vm4993_vm1, %v2660_v40, %v2662_v6  ;;  %v2451_v10 = vsel %vm5001_vm5, %v2438_v43, %v2440_v36  ;;  %vm5003_vm2 = vmmov %vm5002_vm3  ;;  %vm5004_vm1 = vcmask 261120  }
 0x3da   : > { %2999 = vmatprep.subr.mxu0 %v2672_v37  ;;  %v2383_v12 = vsel %vm5003_vm2, %v2370_v38, %v2372_v8  ;;  %vm5012_vm5 = vnez %v4938_v46  ;;  %vm5013_vm3 = vcmask 1039360  }
 0x3db   : > { %3000 = vmatpush1.msra.mxu0 %v2671_v20  ;;  %vm5014_vm2 = vmmov %vm5013_vm3 }
 0x3dc   : > { %v2594_v49 = vpop.permute.xlu0 %2593  ;;  %v2592_v52 = vpop.permute.xlu1 %2591 }
 0x3dd   : > { %v2603_v39 = vsel %vm4994_vm7, %v2590_v11, %v2592_v52  ;;  %v2604_v14 = vsel %vm4995_vm8, %v2592_v52, %v2594_v49  ;;  %vm5005_vm7 = vmmov %vm5004_vm1  ;;  %vm5006_vm8 = vcmask 777216  }
 0x3de   : > { %3333 = vmatprep.subr.msk.mxu0 %vm4996_vm9, %v2604_v14  ;;  %v2323_v11 = vsel %vm5005_vm7, %v2310_v59, %v2312_v30 }
 0x3df   : > { %3334 = vmatpush1.msk.msra.mxu0 %vm4997_vm11, %v2603_v39 }
 0x3e0   : > { %v2526_v44 = vpop.permute.xlu0 %2525  ;;  %v2524_v48 = vpop.permute.xlu1 %2523 }
 0x3e1   : > { %v2535_v42 = vsel %vm4998_vm6, %v2522_v9, %v2524_v48  ;;  %v2536_v18 = vsel %vm4999_vm0, %v2524_v48, %v2526_v44  ;;  %vm5007_vm6 = vmmov %vm5006_vm8  ;;  %vm5010_vm0 = vcmask 793600  }
 0x3e2   : > { %3335 = vmatprep.subr.msk.mxu0 %vm4991_vm13, %v2536_v18  ;;  %vm5011_vm4 = vmmov %vm5010_vm0 }
 0x3e3   : > { %3336 = vmatpush1.msk.msra.mxu0 %vm3785_vm14, %v2535_v42 }
 0x3e4   : > { %3005 = vmatprep.subr.mxu0 %v4507_v50  ;;  %v2444_v57 = vpop.permute.xlu1 %2443  ;;  %v2246_v62 = vpop.permute.xlu0 %2245 }
 0x3e5   : > { %3006 = vmatpush1.msra.mxu0 %v4478_v32  ;;  %v2324_v32 = vsel %vm5004_vm1, %v2312_v30, %v4717_v51  ;;  %vm5015_vm1 = vcmask 7168  }
 0x3e6   : > { %3337 = vmatprep.subr.msk.mxu0 %vm4996_vm9, %v2452_v29  ;;  %vm5016_vm7 = vmmov %vm5015_vm1 }
 0x3e7   : > { %3338 = vmatpush1.msk.msra.mxu0 %vm4997_vm11, %v2451_v10  ;;  %v2453_v61 = vsel %vm5016_vm7, %v4706_v35, %v2444_v57 }
 0x3e8   : > { %3339 = vmatprep.subr.msk.mxu0 %vm4991_vm13, %v2384_v15  ;;  %v2376_v50 = vpop.permute.xlu1 %2375  ;;  %v2446_v45 = vpop.permute.xlu0 %2445 }
 0x3e9   : > { %3340 = vmatpush1.msk.msra.mxu0 %vm3785_vm14, %v2383_v12  ;;  %vm5008_vm14 = vcmask 785408   ;;  %v2454_v54 = vsel %vm5015_vm1, %v2444_v57, %v2446_v45 }
 0x3ea   : > { %3011 = vmatprep.subr.mxu0 %v2324_v32  ;;  %vm5009_vm13 = vmmov %vm5008_vm14 }
 0x3eb   : > { %3012 = vmatpush1.msra.mxu0 %v2323_v11 }
 0x3ec   : > { %v2724_v5 = vpop.permute.xlu1 %2723  ;;  %v2378_v38 = vpop.permute.xlu0 %2377 }
 0x3ed   : > { %v2733_v56 = vsel %vm5006_vm8, %v2722_v34, %v2724_v5  ;;  %v2734_v4 = vsel %vm5007_vm6, %v2724_v5, %v4520_v1  ;;  %vm5017_vm8 = vcmask 252928  }
 0x3ee   : > { %3343 = vmatprep.subr.msk.mxu1 %vm3807_vm15, %v2734_v4  ;;  %vm5018_vm6 = vmmov %vm5017_vm8 }
 0x3ef   : > { %3344 = vmatpush1.msk.msra.mxu1 %vm3813_vm12, %v2733_v56 }
 0x3f0   : > { %v2664_v60 = vpop.permute.xlu1 %2663  ;;  %v2318_v59 = vpop.permute.xlu0 %2317 }
 0x3f1   : > { %v2673_v0 = vsel %vm5008_vm14, %v2662_v6, %v2664_v60  ;;  %v2674_v9 = vsel %vm5009_vm13, %v2664_v60, %v4532_v7  ;;  %vm5019_vm14 = vcmask 269312  }
 0x3f2   : > { %3070 = vmatprep.subr.mxu1 %v2674_v9  ;;  %vm5020_vm13 = vmmov %vm5019_vm14 }
 0x3f3   : > { %3071 = vmatpush1.msra.mxu1 %v2673_v0 }
 0x3f4   : > { %v2596_v28 = vpop.permute.xlu1 %2595  ;;  %v2250_v21 = vpop.permute.xlu0 %2249 }
 0x3f5   : > { %v2605_v43 = vsel %vm5010_vm0, %v2594_v49, %v2596_v28  ;;  %v2606_v1 = vsel %vm5011_vm4, %v2596_v28, %v4538_v55  ;;  %vm5021_vm0 = vcmask 261120  }
 0x3f6   : > { %3345 = vmatprep.subr.msk.mxu1 %vm4351_vm10, %v2606_v1  ;;  %vm5022_vm4 = vmmov %vm5021_vm0 }
 0x3f7   : > { %3346 = vmatpush1.msk.msra.mxu1 %vm5012_vm5, %v2605_v43 }
 0x3f8   : > { %v2528_v47 = vpop.permute.xlu1 %2527 }
 0x3f9   : > { %v2537_v23 = vsel %vm5013_vm3, %v2526_v44, %v2528_v47  ;;  %v2538_v7 = vsel %vm5014_vm2, %v2528_v47, %v4551_v33  ;;  %v2386_v33 = vsel %vm5017_vm8, %v2376_v50, %v2378_v38 }
 0x3fa   : > { %3347 = vmatprep.subr.msk.mxu1 %vm3807_vm15, %v2538_v7 }
 0x3fb   : > { %3348 = vmatpush1.msk.msra.mxu1 %vm3813_vm12, %v2537_v23 }
 0x3fc   : > { %3076 = vmatprep.subr.mxu1 %v4559_v13  ;;  %v2316_v55 = vpop.permute.xlu1 %2315  ;;  %v2385_v13 = vsel %vm5018_vm6, %v4715_v53, %v2376_v50 }
 0x3fd   : > { %3077 = vmatpush1.msra.mxu1 %v4526_v16  ;;  %v2326_v19 = vsel %vm5021_vm0, %v2316_v55, %v2318_v59  ;;  %v2325_v31 = vsel %vm5022_vm4, %v4717_v51, %v2316_v55 }
 0x3fe   : > { %3349 = vmatprep.subr.msk.mxu1 %vm4351_vm10, %v2454_v54 }
 0x3ff   : > { %3350 = vmatpush1.msk.msra.mxu1 %vm5012_vm5, %v2453_v61 }
 0x400   : > { %3351 = vmatprep.subr.msk.mxu1 %vm3807_vm15, %v2386_v33  ;;  %v2244_v58 = vpop.permute.xlu1 %2243  ;;  %vm5023_vm15 = vcmask 588800  }
 0x401   : > { %v2255_v16 = vsel %vm5019_vm14, %v4693_v3, %v2244_v58  ;;  %v2256_v41 = vsel %vm5020_vm13, %v2244_v58, %v2246_v62  ;;  %3352 = vmatpush1.msk.msra.mxu1 %vm3813_vm12, %v2385_v13  ;;  %vm5024_vm12 = vmmov %vm5020_vm13 }
 0x402   : > { %3341 = vmatprep.subr.msk.mxu0 %vm4996_vm9, %v2256_v41  ;;  %3082 = vmatprep.subr.mxu1 %v2326_v19  ;;  %vm5025_vm3 = vmmov %vm5024_vm12 }
 0x403   : > { %3342 = vmatpush1.msk.msra.mxu0 %vm4997_vm11, %v2255_v16  ;;  %3083 = vmatpush1.msra.mxu1 %v2325_v31  ;;  %vm5026_vm9 = vmmov %vm5023_vm15 }
 0x404   : > { %3230 = vmatmul.mubr.msk.f32.vlgmr.msra.gmra.mxu0 %vm5023_vm15, %v4650_v22  ;;  %v2248_v27 = vpop.permute.xlu1 %2247 }
 0x405   : > { %v2257_v3 = vsel %vm5024_vm12, %v2246_v62, %v2248_v27  ;;  %v2258_v35 = vsel %vm5025_vm3, %v2248_v27, %v2250_v21 }
 0x406   : > { %3353 = vmatprep.subr.msk.mxu1 %vm4351_vm10, %v2258_v35 }
 0x407   : > { %3354 = vmatpush1.msk.msra.mxu1 %vm5012_vm5, %v2257_v3 }
 0x408   : > { %3231 = vmatmul.mubr.msk.f32.vlgmr.msra.gmra.mxu1 %vm5026_vm9, %v4650_v22 }
 0x411   : > { %v2836_v2 = vpop.permute.xlu1 %2835 }
 0x474   : > { %v2907_v17 = vpop.f32.mrf.mxu0 }
 0x475   : > { %v2908_v36 = vadd.f32 %v2907_v17, %v2836_v2 }
 0x476   : > { %v2909_v53 = vpop.f32.mrf.mxu0 }
 0x477   : > { %v2910_v26 = vadd.f32 %v2909_v53, %v2836_v2  ;;  %vm3125_vm10 = vcmp.ge.f32.partialorder %v2908_v36, 0.0  ;;  %v3133_v8 = vmul.f32 0.2, %v2908_v36 }
 0x479   : > { %vm3126_vm11 = vcmp.ge.f32.partialorder %v2910_v26, 0.0  ;;  %v3134_v46 = vmul.f32 0.2, %v2910_v26  ;;  %v3141_v22 = vsel %vm3125_vm10, %v2908_v36, %v3133_v8 }
 0x47a   : > { %3149 = vst [vmem:[%s4823_s9] sm:$0xff] %v3141_v22 }
 0x47b   : > { %v3142_v51 = vsel %vm3126_vm11, %v2910_v26, %v3134_v46 }
 0x47c   : > { %3150 = vst [vmem:[%s4823_s9 + $0x8] sm:$0xff] %v3142_v51 }
 0x48a   : > { %v2978_v30 = vpop.f32.mrf.mxu1 }
 0x48b   : > { %v2979_v34 = vadd.f32 %v2978_v30, %v2836_v2 }
 0x48c   : > { %v2980_v24 = vpop.f32.mrf.mxu1 }
 0x48d   : > { %v2981_v63 = vadd.f32 %v2980_v24, %v2836_v2  ;;  %vm3127_vm5 = vcmp.ge.f32.partialorder %v2979_v34, 0.0  ;;  %v3135_v25 = vmul.f32 0.2, %v2979_v34 }
 0x48f   : > { %vm3128_vm2 = vcmp.ge.f32.partialorder %v2981_v63, 0.0  ;;  %v3136_v6 = vmul.f32 0.2, %v2981_v63  ;;  %v3143_v40 = vsel %vm3127_vm5, %v2979_v34, %v3135_v25 }
 0x490   : > { %3151 = vst [vmem:[%s4823_s9 + $0x10] sm:$0xff] %v3143_v40 }
 0x491   : > { %v3144_v20 = vsel %vm3128_vm2, %v2981_v63, %v3136_v6 }
 0x492   : > { %3152 = vst [vmem:[%s4823_s9 + $0x18] sm:$0xff] %v3144_v20 }
 0x4c4   : > { %v3049_v37 = vpop.f32.mrf.mxu0 }
 0x4c5   : > { %v3050_v49 = vadd.f32 %v3049_v37, %v2836_v2 }
 0x4c6   : > { %v3051_v52 = vpop.f32.mrf.mxu0 }
 0x4c7   : > { %vm3129_vm1 = vcmp.ge.f32.partialorder %v3050_v49, 0.0  ;;  %v3137_v39 = vmul.f32 0.2, %v3050_v49  ;;  %v3052_v14 = vadd.f32 %v3051_v52, %v2836_v2 }
 0x4c8   : > { %v3120_v44 = vpop.f32.mrf.mxu1 }
 0x4c9   : > { %v3145_v48 = vsel %vm3129_vm1, %v3050_v49, %v3137_v39  ;;  %vm3130_vm7 = vcmp.ge.f32.partialorder %v3052_v14, 0.0  ;;  %v3138_v42 = vmul.f32 0.2, %v3052_v14  ;;  %v3121_v18 = vadd.f32 %v3120_v44, %v2836_v2 }
 0x4ca   : > { %3153 = vst [vmem:[%s4823_s9 + $0x20] sm:$0xff] %v3145_v48  ;;  %v3122_v57 = vpop.f32.mrf.mxu1 }
 0x4cb   : > { %v3146_v29 = vsel %vm3130_vm7, %v3052_v14, %v3138_v42  ;;  %vm3131_vm8 = vcmp.ge.f32.partialorder %v3121_v18, 0.0  ;;  %v3139_v10 = vmul.f32 0.2, %v3121_v18  ;;  %v3123_v15 = vadd.f32 %v3122_v57, %v2836_v2 }
 0x4cc   : > { %3154 = vst [vmem:[%s4823_s9 + $0x28] sm:$0xff] %v3146_v29 }
 0x4cd   : > { %v3147_v12 = vsel %vm3131_vm8, %v3121_v18, %v3139_v10  ;;  %vm3132_vm6 = vcmp.ge.f32.partialorder %v3123_v15, 0.0  ;;  %v3140_v50 = vmul.f32 0.2, %v3123_v15 }
 0x4ce   : > { %3155 = vst [vmem:[%s4823_s9 + $0x30] sm:$0xff] %v3147_v12 }
 0x4cf   : > { %v3148_v32 = vsel %vm3132_vm6, %v3123_v15, %v3140_v50 }
 0x4d0   : > { %3156 = vst [vmem:[%s4823_s9 + $0x38] sm:$0xff] %v3148_v32 }
 0x4d1 PF: > { %s17_s24 = sadd.s32 1, %s3382_s24  }
 0x4d2   : > { %p14_p4 = scmp.ge.s32.totalorder %s17_s24, 4  }
 0x4d4   :  { %16 = sbr.rel (!%p14_p4) target bundleno = 1 (0x1), region = 78 }

</bundles_post_ra>
